<compile_context>
chip_gen: v5e
topology: v5e:2x2
jax: 0.10.0
libtpu: 0.0.40
codegen_flags: <defaults>
</compile_context>

<pallas_src>
import jax
import jax.numpy as jnp
from jax.experimental import pallas as pl
from jax.experimental.pallas import tpu as pltpu

_HP = jax.lax.Precision.HIGHEST


def attn_gate_kernel(x_ref, combT_ref, colorT_ref, w_mask_ref, b_mask_ref,
                     wctxT_ref, gate_ref):
    b_mask = b_mask_ref[0, 0]            # scalar from SMEM
    w_mask = w_mask_ref[...]             # (1, W) — already scaled by 28*28
    bb = x_ref.shape[0]                  # static batch-tile size

    for b in range(bb):                  # statically unrolled (bb is small)
        x = x_ref[b]                     # (C, P)  pixels on the lane axis
        combT = combT_ref[b]             # (W, C)  == ((w_obj@obj)@obj2color)^T
        colorT = colorT_ref[b]           # (C, W)

        # attn^T = comb^T @ x : (W, P)   (obj2color pre-folded in the wrapper)
        attnT = jnp.dot(combT, x, preferred_element_type=jnp.float32,
                        precision=_HP)

        # softmax over words (axis 0, W sublanes) — exact normalisation
        m_w = jnp.max(attnT, axis=0, keepdims=True)
        e_w = jnp.exp(attnT - m_w)
        attn_wordT = e_w / jnp.sum(e_w, axis=0, keepdims=True)      # (W, P)

        # weightedContext^T = colorT @ attn_word^T : (C, P) — lane-dense store
        wctxT_ref[b] = jnp.dot(colorT, attn_wordT,
                               preferred_element_type=jnp.float32,
                               precision=_HP).astype(wctxT_ref.dtype)

        # second softmax: over pixels (lane axis), per word.
        # attn_wordT is in [0, 1] so exp cannot overflow -> no max-subtract.
        e_p = jnp.exp(attn_wordT)
        attn_region = e_p / jnp.sum(e_p, axis=-1, keepdims=True)    # (W, P)

        # conv_mask + sigmoid; the "*784 - 1" is folded into w_mask / b_mask.
        gate = jnp.dot(w_mask, attn_region,
                       preferred_element_type=jnp.float32,
                       precision=_HP)                               # (1, P)
        gate_ref[b] = jax.nn.sigmoid(gate + b_mask).astype(gate_ref.dtype)


def attention_gate(x_nchw, color_emb, object_emb, obj2color,
                   w_obj, w_col, w_mask, b_mask, *, bb=None):
    B, C, ih, iw = x_nchw.shape
    P = ih * iw
    W = object_emb.shape[2]

    # Batch-tile size: as large as possible while keeping >= 2 grid steps
    # (so the "parallel" batch axis can split across v7x's 2 TensorCores).
    if bb is None:
        bb = max(1, B // 2)
        while B % bb:
            bb -= 1
    assert B % bb == 0

    # ---- glue (all tiny, E/W-scale; done once in XLA) -----------------------
    # x could be fed as bf16 to halve HBM traffic if the model tolerates it;
    # kept f32 here for exact parity with the torch module.
    x = x_nchw.reshape(B, C, P).astype(jnp.float32)                  # (B, C, P)
    objectT = jnp.einsum('ce,bew->bcw', w_obj.astype(jnp.float32),
                         object_emb.astype(jnp.float32), precision=_HP)
    combT = jnp.einsum('bcw,bwv->bvc', objectT,
                       obj2color.astype(jnp.float32), precision=_HP)  # (B, W, C)
    colorT = jnp.einsum('ce,bew->bcw', w_col.astype(jnp.float32),
                        color_emb.astype(jnp.float32), precision=_HP) # (B, C, W)
    # fold "attn_region * 784 - 1" into the conv_mask weights/bias:
    #   w' = 784 * w,   b' = b - sum(w)
    w_mask_f = w_mask.reshape(1, W).astype(jnp.float32)
    w_mask_row = (28.0 * 28.0) * w_mask_f                            # (1, W)
    b_mask_s = (b_mask.astype(jnp.float32)
                - jnp.sum(w_mask_f)).reshape(1, 1)                   # (1, 1)

    wctxT, gate = pl.pallas_call(
        attn_gate_kernel,
        out_shape=(jax.ShapeDtypeStruct((B, C, P), jnp.float32),
                   jax.ShapeDtypeStruct((B, 1, P), jnp.float32)),
        grid_spec=pltpu.PrefetchScalarGridSpec(
            num_scalar_prefetch=0,
            grid=(B // bb,),
            in_specs=[
                pl.BlockSpec((bb, C, P), lambda b: (b, 0, 0)),       # x
                pl.BlockSpec((bb, W, C), lambda b: (b, 0, 0)),       # combT
                pl.BlockSpec((bb, C, W), lambda b: (b, 0, 0)),       # colorT
                pl.BlockSpec((1, W), lambda b: (0, 0)),              # w_mask'
                pl.BlockSpec(memory_space=pltpu.MemorySpace.SMEM),   # b_mask'
            ],
            out_specs=[
                pl.BlockSpec((bb, C, P), lambda b: (b, 0, 0)),       # wctx^T
                pl.BlockSpec((bb, 1, P), lambda b: (b, 0, 0)),       # gate
            ],
        ),
        compiler_params=pltpu.CompilerParams(
            dimension_semantics=("parallel",)),
    )(x, combT, colorT, w_mask_row, b_mask_s)

    weighted_context = jnp.transpose(wctxT, (0, 2, 1))               # (B, P, C)
    gate_mask = gate.reshape(B, 1, ih, iw)
    return weighted_context, gate_mask


def reference(x_nchw, color_emb, object_emb, obj2color,
              w_obj, w_col, w_mask, b_mask):
    B, C, ih, iw = x_nchw.shape
    P = ih * iw
    W = object_emb.shape[2]
    targetT = jnp.transpose(x_nchw.reshape(B, C, P), (0, 2, 1))          # (B,P,C)
    objectT = jnp.einsum('ce,bew->bcw', w_obj, object_emb, precision=_HP)
    colorT = jnp.einsum('ce,bew->bcw', w_col, color_emb, precision=_HP)
    attn = jnp.einsum('bpc,bcw->bpw', targetT, objectT, precision=_HP)
    attn = jnp.einsum('bpw,bwv->bpv', attn, obj2color, precision=_HP)
    attn_word = jax.nn.softmax(attn, axis=-1)                            # (B,P,W)
    attn_wordT = jnp.transpose(attn_word, (0, 2, 1))                     # (B,W,P)
    wctx = jnp.transpose(
        jnp.einsum('bcw,bwp->bcp', colorT, attn_wordT, precision=_HP),
        (0, 2, 1))                                                       # (B,P,C)
    attn_region = jax.nn.softmax(attn_wordT, axis=-1) * 28 * 28 - 1      # (B,W,P)
    gate = jnp.einsum('w,bwp->bp', w_mask.reshape(W), attn_region,
                      precision=_HP) + b_mask
    gate = jax.nn.sigmoid(gate).reshape(B, 1, ih, iw)
    return wctx, gate


if __name__ == "__main__":
    # small shapes consistent with the module
    B, C, E, W = 4, 32, 16, 8          # channel_dim=32, emb_dim=16, word_num=8
    ih = iw = 16                       # pixel_num = 256 (multiple of 128)
    key = jax.random.PRNGKey(0)
    k = jax.random.split(key, 8)

    x = jax.random.normal(k[0], (B, C, ih, iw), jnp.float32)
    color_emb = jax.random.normal(k[1], (B, E, W), jnp.float32)
    object_emb = jax.random.normal(k[2], (B, E, W), jnp.float32)
    obj2color = jax.random.normal(k[3], (B, W, W), jnp.float32)

    # deterministic parameter init (synthetic; mirrors PyTorch shapes)
    conv_bound = 1.0 / jnp.sqrt(E)                     # conv1x1 default-ish
    w_obj = jax.random.uniform(k[4], (C, E), jnp.float32, -conv_bound, conv_bound)
    w_col = jax.random.uniform(k[5], (C, E), jnp.float32, -conv_bound, conv_bound)
    xav = jnp.sqrt(6.0 / (W + 1.0))                    # xavier_uniform for conv_mask
    w_mask = jax.random.uniform(k[6], (W,), jnp.float32, -xav, xav)
    b_mask = jnp.zeros((), jnp.float32)                # constant_(bias, 0)

    wctx, gate_mask = attention_gate(x, color_emb, object_emb, obj2color,
                                     w_obj, w_col, w_mask, b_mask)
    jax.block_until_ready((wctx, gate_mask))

    wctx_ref, gate_mask_ref = reference(x, color_emb, object_emb, obj2color,
                                        w_obj, w_col, w_mask, b_mask)
    assert wctx.shape == (B, ih * iw, C)
    assert gate_mask.shape == (B, 1, ih, iw)
    assert jnp.allclose(wctx, wctx_ref, atol=1e-3, rtol=1e-3)
    assert jnp.allclose(gate_mask, gate_mask_ref, atol=1e-3)
    print("KERNEL_OK")
</pallas_src>

<mosaic_0001>
module attributes {stable_mosaic.version = 11 : i64} {
  func.func @attn_gate_kernel(%arg0: i32, %arg1: memref<2x32x256xf32, #tpu.memory_space<vmem>>, %arg2: memref<2x8x32xf32, #tpu.memory_space<vmem>>, %arg3: memref<2x32x8xf32, #tpu.memory_space<vmem>>, %arg4: memref<1x8xf32, #tpu.memory_space<vmem>>, %arg5: memref<1x1xf32, #tpu.memory_space<smem>>, %arg6: memref<2x32x256xf32, #tpu.memory_space<vmem>>, %arg7: memref<2x1x256xf32, #tpu.memory_space<vmem>>) attributes {dimension_semantics = [#tpu.dimension_semantics<parallel>], iteration_bounds = array<i64: 2>, scalar_prefetch = 0 : i64, scratch_operands = 0 : i64, tpu.core_type = #tpu.core_type<tc>, window_params = [{transform_indices = @transform_0, window_bounds = array<i64: 2, 32, 256>}, {transform_indices = @transform_1, window_bounds = array<i64: 2, 8, 32>}, {transform_indices = @transform_2, window_bounds = array<i64: 2, 32, 8>}, {pipeline_mode = #tpu.pipeline_mode<synchronous>, transform_indices = @transform_3, window_bounds = array<i64: 1, 8>}, {transform_indices = @transform_4, window_bounds = array<i64: 1, 1>}, {transform_indices = @transform_5, window_bounds = array<i64: 2, 32, 256>}, {transform_indices = @transform_6, window_bounds = array<i64: 2, 1, 256>}]} {
    %c0 = arith.constant 0 : index
    %c0_0 = arith.constant 0 : index
    %0 = memref.load %arg5[%c0, %c0_0] : memref<1x1xf32, #tpu.memory_space<smem>>
    %c0_1 = arith.constant 0 : index
    %c0_2 = arith.constant 0 : index
    %1 = vector.load %arg4[%c0_1, %c0_2] : memref<1x8xf32, #tpu.memory_space<vmem>>, vector<1x8xf32>
    %c0_3 = arith.constant 0 : index
    %c0_4 = arith.constant 0 : index
    %c0_5 = arith.constant 0 : index
    %2 = vector.load %arg1[%c0_3, %c0_4, %c0_5] : memref<2x32x256xf32, #tpu.memory_space<vmem>>, vector<1x32x256xf32>
    %3 = vector.shape_cast %2 : vector<1x32x256xf32> to vector<32x256xf32>
    %c0_6 = arith.constant 0 : index
    %c0_7 = arith.constant 0 : index
    %c0_8 = arith.constant 0 : index
    %4 = vector.load %arg2[%c0_6, %c0_7, %c0_8] : memref<2x8x32xf32, #tpu.memory_space<vmem>>, vector<1x8x32xf32>
    %5 = vector.shape_cast %4 : vector<1x8x32xf32> to vector<8x32xf32>
    %c0_9 = arith.constant 0 : index
    %c0_10 = arith.constant 0 : index
    %c0_11 = arith.constant 0 : index
    %6 = vector.load %arg3[%c0_9, %c0_10, %c0_11] : memref<2x32x8xf32, #tpu.memory_space<vmem>>, vector<1x32x8xf32>
    %7 = vector.shape_cast %6 : vector<1x32x8xf32> to vector<32x8xf32>
    %cst = arith.constant dense<0.000000e+00> : vector<8x256xf32>
    %8 = tpu.matmul %5, %3, %cst {dimension_numbers = #tpu.dot_dimension_numbers<[1], [0], [0], [1], [0, 0, 1, 1], [], []>, precision = #tpu.contract_precision<fp32>} : vector<8x32xf32>, vector<32x256xf32>, vector<8x256xf32> -> vector<8x256xf32>
    %cst_12 = arith.constant dense<0xFF800000> : vector<256xf32>
    %9 = vector.multi_reduction <maximumf>, %8, %cst_12 [0] : vector<8x256xf32> to vector<256xf32>
    %10 = vector.shape_cast %9 : vector<256xf32> to vector<1x256xf32>
    %11 = vector.broadcast %10 : vector<1x256xf32> to vector<8x256xf32>
    %12 = arith.subf %8, %11 : vector<8x256xf32>
    %13 = math.exp %12 : vector<8x256xf32>
    %cst_13 = arith.constant dense<0.000000e+00> : vector<256xf32>
    %14 = vector.multi_reduction <add>, %13, %cst_13 [0] : vector<8x256xf32> to vector<256xf32>
    %15 = vector.shape_cast %14 : vector<256xf32> to vector<1x256xf32>
    %16 = vector.broadcast %15 : vector<1x256xf32> to vector<8x256xf32>
    %17 = arith.divf %13, %16 : vector<8x256xf32>
    %cst_14 = arith.constant dense<0.000000e+00> : vector<32x256xf32>
    %18 = tpu.matmul %7, %17, %cst_14 {dimension_numbers = #tpu.dot_dimension_numbers<[1], [0], [0], [1], [0, 0, 1, 1], [], []>, precision = #tpu.contract_precision<fp32>} : vector<32x8xf32>, vector<8x256xf32>, vector<32x256xf32> -> vector<32x256xf32>
    %c0_15 = arith.constant 0 : index
    %c0_16 = arith.constant 0 : index
    %c0_17 = arith.constant 0 : index
    %19 = vector.load %arg6[%c0_15, %c0_16, %c0_17] : memref<2x32x256xf32, #tpu.memory_space<vmem>>, vector<1x32x256xf32>
    %20 = vector.shape_cast %19 : vector<1x32x256xf32> to vector<32x256xf32>
    %21 = vector.shape_cast %18 : vector<32x256xf32> to vector<1x32x256xf32>
    tpu.vector_store %arg6[%c0_15, %c0_16, %c0_17], %21 {strides = array<i32>} : memref<2x32x256xf32, #tpu.memory_space<vmem>>, vector<1x32x256xf32>,
    %22 = math.exp %17 : vector<8x256xf32>
    %cst_18 = arith.constant dense<0.000000e+00> : vector<8xf32>
    %23 = vector.multi_reduction <add>, %22, %cst_18 [1] : vector<8x256xf32> to vector<8xf32>
    %24 = vector.shape_cast %23 : vector<8xf32> to vector<8x1xf32>
    %25 = vector.broadcast %24 : vector<8x1xf32> to vector<8x256xf32>
    %26 = arith.divf %22, %25 : vector<8x256xf32>
    %cst_19 = arith.constant dense<0.000000e+00> : vector<1x256xf32>
    %27 = tpu.matmul %1, %26, %cst_19 {dimension_numbers = #tpu.dot_dimension_numbers<[1], [0], [0], [1], [0, 0, 1, 1], [], []>, precision = #tpu.contract_precision<fp32>} : vector<1x8xf32>, vector<8x256xf32>, vector<1x256xf32> -> vector<1x256xf32>
    %28 = vector.broadcast %0 : f32 to vector<1x256xf32>
    %29 = arith.addf %27, %28 : vector<1x256xf32>
    %30 = arith.negf %29 : vector<1x256xf32>
    %31 = math.exp %30 : vector<1x256xf32>
    %cst_20 = arith.constant 1.000000e+00 : f32
    %32 = vector.broadcast %cst_20 : f32 to vector<1x256xf32>
    %33 = arith.addf %32, %31 : vector<1x256xf32>
    %34 = arith.divf %32, %33 : vector<1x256xf32>
    %c0_21 = arith.constant 0 : index
    %c0_22 = arith.constant 0 : index
    %c0_23 = arith.constant 0 : index
    %35 = vector.load %arg7[%c0_21, %c0_22, %c0_23] : memref<2x1x256xf32, #tpu.memory_space<vmem>>, vector<1x1x256xf32>
    %36 = vector.shape_cast %35 : vector<1x1x256xf32> to vector<1x256xf32>
    %37 = vector.shape_cast %34 : vector<1x256xf32> to vector<1x1x256xf32>
    tpu.vector_store %arg7[%c0_21, %c0_22, %c0_23], %37 {strides = array<i32>} : memref<2x1x256xf32, #tpu.memory_space<vmem>>, vector<1x1x256xf32>,
    %c1 = arith.constant 1 : index
    %c0_24 = arith.constant 0 : index
    %c0_25 = arith.constant 0 : index
    %38 = vector.load %arg1[%c1, %c0_24, %c0_25] : memref<2x32x256xf32, #tpu.memory_space<vmem>>, vector<1x32x256xf32>
    %39 = vector.shape_cast %38 : vector<1x32x256xf32> to vector<32x256xf32>
    %c1_26 = arith.constant 1 : index
    %c0_27 = arith.constant 0 : index
    %c0_28 = arith.constant 0 : index
    %40 = vector.load %arg2[%c1_26, %c0_27, %c0_28] : memref<2x8x32xf32, #tpu.memory_space<vmem>>, vector<1x8x32xf32>
    %41 = vector.shape_cast %40 : vector<1x8x32xf32> to vector<8x32xf32>
    %c1_29 = arith.constant 1 : index
    %c0_30 = arith.constant 0 : index
    %c0_31 = arith.constant 0 : index
    %42 = vector.load %arg3[%c1_29, %c0_30, %c0_31] : memref<2x32x8xf32, #tpu.memory_space<vmem>>, vector<1x32x8xf32>
    %43 = vector.shape_cast %42 : vector<1x32x8xf32> to vector<32x8xf32>
    %cst_32 = arith.constant dense<0.000000e+00> : vector<8x256xf32>
    %44 = tpu.matmul %41, %39, %cst_32 {dimension_numbers = #tpu.dot_dimension_numbers<[1], [0], [0], [1], [0, 0, 1, 1], [], []>, precision = #tpu.contract_precision<fp32>} : vector<8x32xf32>, vector<32x256xf32>, vector<8x256xf32> -> vector<8x256xf32>
    %cst_33 = arith.constant dense<0xFF800000> : vector<256xf32>
    %45 = vector.multi_reduction <maximumf>, %44, %cst_33 [0] : vector<8x256xf32> to vector<256xf32>
    %46 = vector.shape_cast %45 : vector<256xf32> to vector<1x256xf32>
    %47 = vector.broadcast %46 : vector<1x256xf32> to vector<8x256xf32>
    %48 = arith.subf %44, %47 : vector<8x256xf32>
    %49 = math.exp %48 : vector<8x256xf32>
    %cst_34 = arith.constant dense<0.000000e+00> : vector<256xf32>
    %50 = vector.multi_reduction <add>, %49, %cst_34 [0] : vector<8x256xf32> to vector<256xf32>
    %51 = vector.shape_cast %50 : vector<256xf32> to vector<1x256xf32>
    %52 = vector.broadcast %51 : vector<1x256xf32> to vector<8x256xf32>
    %53 = arith.divf %49, %52 : vector<8x256xf32>
    %cst_35 = arith.constant dense<0.000000e+00> : vector<32x256xf32>
    %54 = tpu.matmul %43, %53, %cst_35 {dimension_numbers = #tpu.dot_dimension_numbers<[1], [0], [0], [1], [0, 0, 1, 1], [], []>, precision = #tpu.contract_precision<fp32>} : vector<32x8xf32>, vector<8x256xf32>, vector<32x256xf32> -> vector<32x256xf32>
    %c1_36 = arith.constant 1 : index
    %c0_37 = arith.constant 0 : index
    %c0_38 = arith.constant 0 : index
    %55 = vector.load %arg6[%c1_36, %c0_37, %c0_38] : memref<2x32x256xf32, #tpu.memory_space<vmem>>, vector<1x32x256xf32>
    %56 = vector.shape_cast %55 : vector<1x32x256xf32> to vector<32x256xf32>
    %57 = vector.shape_cast %54 : vector<32x256xf32> to vector<1x32x256xf32>
    tpu.vector_store %arg6[%c1_36, %c0_37, %c0_38], %57 {strides = array<i32>} : memref<2x32x256xf32, #tpu.memory_space<vmem>>, vector<1x32x256xf32>,
    %58 = math.exp %53 : vector<8x256xf32>
    %cst_39 = arith.constant dense<0.000000e+00> : vector<8xf32>
    %59 = vector.multi_reduction <add>, %58, %cst_39 [1] : vector<8x256xf32> to vector<8xf32>
    %60 = vector.shape_cast %59 : vector<8xf32> to vector<8x1xf32>
    %61 = vector.broadcast %60 : vector<8x1xf32> to vector<8x256xf32>
    %62 = arith.divf %58, %61 : vector<8x256xf32>
    %cst_40 = arith.constant dense<0.000000e+00> : vector<1x256xf32>
    %63 = tpu.matmul %1, %62, %cst_40 {dimension_numbers = #tpu.dot_dimension_numbers<[1], [0], [0], [1], [0, 0, 1, 1], [], []>, precision = #tpu.contract_precision<fp32>} : vector<1x8xf32>, vector<8x256xf32>, vector<1x256xf32> -> vector<1x256xf32>
    %64 = vector.broadcast %0 : f32 to vector<1x256xf32>
    %65 = arith.addf %63, %64 : vector<1x256xf32>
    %66 = arith.negf %65 : vector<1x256xf32>
    %67 = math.exp %66 : vector<1x256xf32>
    %cst_41 = arith.constant 1.000000e+00 : f32
    %68 = vector.broadcast %cst_41 : f32 to vector<1x256xf32>
    %69 = arith.addf %68, %67 : vector<1x256xf32>
    %70 = arith.divf %68, %69 : vector<1x256xf32>
    %c1_42 = arith.constant 1 : index
    %c0_43 = arith.constant 0 : index
    %c0_44 = arith.constant 0 : index
    %71 = vector.load %arg7[%c1_42, %c0_43, %c0_44] : memref<2x1x256xf32, #tpu.memory_space<vmem>>, vector<1x1x256xf32>
    %72 = vector.shape_cast %71 : vector<1x1x256xf32> to vector<1x256xf32>
    %73 = vector.shape_cast %70 : vector<1x256xf32> to vector<1x1x256xf32>
    tpu.vector_store %arg7[%c1_42, %c0_43, %c0_44], %73 {strides = array<i32>} : memref<2x1x256xf32, #tpu.memory_space<vmem>>, vector<1x1x256xf32>,
    return
  }
  func.func @transform_0(%arg0: i32) -> (i32, i32, i32) {
    %c0_i32 = arith.constant 0 : i32
    %c0_i32_0 = arith.constant 0 : i32
    %c0_i32_1 = arith.constant 0 : i32
    return %arg0, %c0_i32, %c0_i32_0 : i32, i32, i32
  }
  func.func @transform_1(%arg0: i32) -> (i32, i32, i32) {
    %c0_i32 = arith.constant 0 : i32
    %c0_i32_0 = arith.constant 0 : i32
    %c0_i32_1 = arith.constant 0 : i32
    return %arg0, %c0_i32, %c0_i32_0 : i32, i32, i32
  }
  func.func @transform_2(%arg0: i32) -> (i32, i32, i32) {
    %c0_i32 = arith.constant 0 : i32
    %c0_i32_0 = arith.constant 0 : i32
    %c0_i32_1 = arith.constant 0 : i32
    return %arg0, %c0_i32, %c0_i32_0 : i32, i32, i32
  }
  func.func @transform_3(%arg0: i32) -> (i32, i32) {
    %c0_i32 = arith.constant 0 : i32
    %c0_i32_0 = arith.constant 0 : i32
    %c0_i32_1 = arith.constant 0 : i32
    return %c0_i32, %c0_i32_0 : i32, i32
  }
  func.func @transform_4(%arg0: i32) -> (i32, i32) {
    %c0_i32 = arith.constant 0 : i32
    %c0_i32_0 = arith.constant 0 : i32
    %c0_i32_1 = arith.constant 0 : i32
    return %c0_i32, %c0_i32_0 : i32, i32
  }
  func.func @transform_5(%arg0: i32) -> (i32, i32, i32) {
    %c0_i32 = arith.constant 0 : i32
    %c0_i32_0 = arith.constant 0 : i32
    %c0_i32_1 = arith.constant 0 : i32
    return %arg0, %c0_i32, %c0_i32_0 : i32, i32, i32
  }
  func.func @transform_6(%arg0: i32) -> (i32, i32, i32) {
    %c0_i32 = arith.constant 0 : i32
    %c0_i32_0 = arith.constant 0 : i32
    %c0_i32_1 = arith.constant 0 : i32
    return %arg0, %c0_i32, %c0_i32_0 : i32, i32, i32
  }
}

</mosaic_0001>

<bundles_post_ra>
// kernel: tpu_custom_call.1
= control target key start
LH: loop header
LB: loop body
LE: loop exit
PB: predicated region body
PF: predicated region fallthrough
CT: control target
= control target key end

     0   :  { %s4207_s0 = inlined_call_operand.hbm [shape: f32[4,32,256], index: 0, kind: input, shape index: {}]   ;;  %s4208_s1 = inlined_call_operand.vmem [shape: f32[4,8,32], index: 1, kind: input, shape index: {}]   ;;  %s4209_s2 = inlined_call_operand.vmem [shape: f32[4,32,8], index: 2, kind: input, shape index: {}]   ;;  %s4210_s3 = inlined_call_operand.vmem [shape: f32[1,8], index: 3, kind: input, shape index: {}]   ;;  %s4211_s4 = inlined_call_operand.<no memory space> [shape: f32[1,1], index: 4, kind: input, shape index: {}]   ;;  %s4212_s5 = inlined_call_operand.hbm [shape: f32[4,32,256], index: 5, kind: output, shape index: {0}]   ;;  %s4213_s6 = inlined_call_operand.hbm [shape: f32[4,1,256], index: 6, kind: output, shape index: {1}]  }
   0x1   :  { %12 = sst [smem:[#allocation2]] %s4211_s4 }
   0x2   :  { %13 = vsyncpa [#allocation4], 0 }
   0x3   :  { %15 = vsyncpa [#allocation4 + $0x1], 0 }
   0x4   :  { %16 = vsyncpa [#allocation5], 0 }
   0x5   :  { %18 = vsyncpa [#allocation5 + $0x1], 0 }
   0x6   :  { %19 = vsyncpa [#allocation8], 0 }
   0x7   :  { %21 = vsyncpa [#allocation8 + $0x1], 0  ;;  %s3460_s23 = smov 0   ;;  %s3462_s24 = smov 0  }
   0x8   :  { %s3464_s25 = smov 0   ;;  %s3466_s26 = smov 0  }
   0x9 LB: > { %s3481_s4 = sadd.s32 4294967295, %s3414_s26   ;;  %s3128_s27 = sadd.s32 4294967294, %s3414_s26   ;;  %s3414_s26 = sphi %s3466_s26, %s4229_s26   ;;  %s3410_s25 = sphi %s3464_s25, %s4228_s25   ;;  %s3406_s24 = sphi %s3462_s24, %s4227_s24   ;;  %s3402_s23 = sphi %s3460_s23, %s4226_s23  }
   0xa   : > { %s3485_s28 = sadd.s32 1, %s3414_s26   ;;  %s34_s29 = sadd.s32 1, %s3410_s25 }
   0xb   : > { %s31_s30 = ssub.s32 %s3414_s26, %s3485_s28  ;;  %p41_p0 = scmp.ne.s32.totalorder %s3410_s25, %s3406_s24 }
   0xc   : > { %p32_p1 = scmp.eq.s32.totalorder %s31_s30, 0  ;;  %p42_p2 = scmp.eq.s32.totalorder %s3414_s26, 0 }
   0xd   : > { %p47_p3 = scmp.ne.s32.totalorder %s3406_s24, %s3402_s23  ;;  %p48_p4 = scmp.eq.s32.totalorder %s3481_s4, 0 }
   0xe   : > { %s3497_s7 = scalar_select %p32_p1, %s3410_s25, %s34_s29  }
   0xf   : > { %p3499_p5 = por %p42_p2, %p41_p0  ;;  %p3503_p6 = por %p48_p4, %p47_p3 }
  0x10   : > { %p165_p7 = scmp.eq.s32.totalorder %s3481_s4, 1  ;;  %p171_p8 = scmp.eq.s32.totalorder %s3128_s27, 1 }
  0x11   : > { %p3202_p10 = scmp.lt.s32.totalorder %s3414_s26, 2  ;;  %s223_s12 = sand.u32 1, %s3410_s25  }
  0x12   : > { %p3510_p11 = por %p165_p7, %p41_p0  ;;  %p3514_p12 = por %p171_p8, %p47_p3 }
  0x13   : > { %s3180_s13 = sshll.u32 %s3414_s26, 7  ;;  %s3131_s14 = sshll.u32 %s223_s12, 7 }
  0x14   : > { %s233_s17 = scalar_lea.hbm %s4207_s0, %s3180_s13  ;;  %s227_s19 = scalar_lea.vmem [#allocation3], %s3131_s14 }
  0x15   : > { %s234_s18 = sshll.u32 %s233_s17, 4  ;;  %s236_s20 = sshll.u32 %s227_s19, 4  ;;  %s235_s18 = int_to_ptr.hbm [resolvable:$true] %s234_s18  ;;  %s237_s20 = int_to_ptr.vmem [resolvable:$true] %s236_s20 }
  0x16   : > { %p3525_p13 = pnand %p3202_p10, %p3499_p5  ;;  %p3135_p0 = scmp.ge.s32.totalorder %s3414_s26, 1 }
  0x17   : > { %p263_p1 = scmp.lt.s32.totalorder %s3414_s26, 3  ;;  %s224_s22 = scalar_lea.sflag [#allocation4], %s223_s12 }
  0x18   : > { %s3286_s27 = sshra.s32 %s235_s18, 4  ;;  %p3290_p3 = pneg %p3525_p13  ;;  %s3287_s27 = int_to_ptr.hbm [resolvable:$true] %s3286_s27 }
  0x19   : > { %s3288_s29 = scalar_lea.hbm %s3287_s27, 128  ;;  %s3293_s8 = scalar_lea.hbm %s4207_s0, 256 }
  0x1a   : > { %p3289_p2 = scmp.ne.s32.totalorder %s3287_s27, %s3288_s29  ;;  %p3294_p5 = scmp.lt.s32.totalorder %s3287_s27, %s4207_s0 }
  0x1b   : > { %p3295_p8 = scmp.lt.s32.totalorder %s3293_s8, %s3288_s29 }
  0x1c   : > { %p3291_p4 = pnand %p3290_p3, %p3289_p2 }
  0x1d   : > { %p3296_p10 = por %p3295_p8, %p3294_p5 }
  0x1e   : > { %p3292_p7 = pneg %p3291_p4 }
  0x20   : > { %p3297_p9 = pnand %p3296_p10, %p3292_p7 }
  0x22   : > { %3300 = shalt.err (!%p3297_p9)
}
  0x23   : > { %s3416_s12 = smov 256   ;;  %s3417_s16 = smov 16  }
  0x24   : > { %3194 = dma.hbm_to_vmem [thread:$0]  (!%p3525_p13), %s235_s18, 2048, %s237_s20, %s224_s22, %s3416_s12, %s3416_s12, %s3417_s16  }
  0x25   : > { %p264_p2 = pnand %p3135_p0, %p263_p1 }
  0x26   : > { %s3546_s17 = sand.u32 (!%p264_p2), 1, %s3406_s24  }
  0x27   : > { %267 = sbr.rel (%p264_p2) target bundleno = 991 (0x3df), region = 40  ;;  %s3136_s19 = sshll.u32 (!%p264_p2), %s3546_s17, 7 }
  0x28   : > { %s270_s27 = scalar_lea.sflag (!%p264_p2), [#allocation4], %s3546_s17  ;;  %s3552_s29 = scalar_lea.vmem (!%p264_p2), [#allocation3], %s3136_s19 }
  0x2c   : > { %3389 = dma.done.wait (%p3503_p6), %s270_s27, 2048  }
  0x2d   : > { %3391 = vsyncadd (%p3503_p6), %s270_s27, 4294965248  ;;  %s3139_s18 = sshll.u32 %s3481_s4, 1  ;;  %vm350_vm0 = vcmask 261120   ;;  %v343_v0 = vld [vmem:[%s3552_s29 + $0x30] sm:$0xff]  ;;  %v341_v1 = vld [vmem:[%s3552_s29 + $0x20] sm:$0xff]  ;;  %vm784_vm1 = vcmask 64512  }
  0x2e   : > { %p321_p9 = scmp.lt.s32.totalorder %s3139_s18, 3  ;;  %v339_v2 = vld [vmem:[%s3552_s29 + $0x10] sm:$0xff]  ;;  %v3568_v3 = vand.u32 4294901760, %v343_v0  ;;  %v3570_v4 = vand.u32 4294901760, %v341_v1  ;;  %v337_v6 = vld [vmem:[%s3552_s29] sm:$0xff]  ;;  %v344_v12 = vld [vmem:[%s3552_s29 + $0x38] sm:$0xff] }
  0x2f   : > { %v3572_v5 = vand.u32 4294901760, %v339_v2  ;;  %v3575_v9 = vand.u32 4294901760, %v337_v6  ;;  %v342_v13 = vld [vmem:[%s3552_s29 + $0x28] sm:$0xff]  ;;  %v3591_v19 = vand.u32 4294901760, %v344_v12  ;;  %v340_v25 = vld [vmem:[%s3552_s29 + $0x18] sm:$0xff]  ;;  %s3889_s16 = scalar_lea.vmem [#allocation6], %s3136_s19 }
  0x30   : > { %s4231_s18 = smov (!%p321_p9, %s3139_s18), 3  ;;  %367 = vmatpush.msra.mxu0 %v3568_v3  ;;  %v396_v14 = vsub.f32 %v343_v0, %v3568_v3  ;;  %467 = vmatpush.msra.mxu3 %v3568_v3  ;;  %v402_v15 = vsub.f32 %v341_v1, %v3570_v4  ;;  %v3593_v20 = vand.u32 4294901760, %v342_v13  ;;  %v3615_v35 = vand.u32 4294901760, %v340_v25  ;;  %v338_v36 = vld [vmem:[%s3552_s29 + $0x8] sm:$0xff]  ;;  %s335_s19 = sld [smem:[#allocation2]] }
  0x31   : > { %s3140_s20 = sshll.u32 %s4231_s18, 3  ;;  %v408_v16 = vsub.f32 %v339_v2, %v3572_v5  ;;  %v3589_v18 = vsub.f32 %v337_v6, %v3575_v9  ;;  %v3602_v26 = vsub.f32 %v344_v12, %v3591_v19  ;;  %v557_v46 = vand.u32 4294901760, %v338_v36  ;;  %s3181_s9 = sshll.u32 %s4231_s18, 5 }
  0x32   : > { %s324_s30 = scalar_lea.vmem %s4208_s1, %s3140_s20  ;;  %438 = vmatpush.msra.mxu2 %v396_v14  ;;  %369 = vmatpush.msra.mxu0 %v3570_v4  ;;  %v397_v21 = vand.u32 4294901760, %v396_v14  ;;  %v403_v22 = vand.u32 4294901760, %v402_v15  ;;  %v3606_v28 = vsub.f32 %v342_v13, %v3593_v20  ;;  %v593_v43 = vsub.f32 %v340_v25, %v3615_v35  ;;  %s3656_s14 = scalar_lea.vmem %s4209_s2, %s3181_s9 }
  0x33   : > { %v345_v7 = vld [vmem:[%s324_s30] sm:$0xff]  ;;  %v3154_v8 = vld [vmem:[%s324_s30 + $0x8] sm:$0xff]  ;;  %v409_v24 = vand.u32 4294901760, %v408_v16  ;;  %469 = vmatpush.msra.mxu3 %v3570_v4  ;;  %v415_v27 = vand.u32 4294901760, %v3589_v18  ;;  %v582_v33 = vand.u32 4294901760, %v3602_v26  ;;  %v599_v51 = vsub.f32 %v338_v36, %v557_v46  ;;  %s3138_s27 = sshll.u32 %s3546_s17, 2 }
  0x34   : > { %v352_v10 = vsel %vm350_vm0, %v345_v7, 0  ;;  %v3577_v11 = vsel %vm350_vm0, %v3154_v8, 0  ;;  %441 = vmatpush.msra.mxu2 %v402_v15  ;;  %371 = vmatpush.msra.mxu0 %v3572_v5  ;;  %v398_v29 = vsub.f32 %v396_v14, %v397_v21  ;;  %v404_v30 = vsub.f32 %v402_v15, %v403_v22  ;;  %s3183_s18 = sshll.u32 %s3481_s4, 7  ;;  %s2978_s30 = sshll.u32 %s3889_s16, 4  ;;  %s2979_s30 = int_to_ptr.vmem [resolvable:$true] %s2978_s30 }
  0x35   : > { %v3586_v17 = vand.u32 4294901760, %v352_v10  ;;  %v410_v32 = vsub.f32 %v408_v16, %v409_v24  ;;  %471 = vmatpush.msra.mxu3 %v3572_v5  ;;  %v588_v34 = vand.u32 4294901760, %v3606_v28  ;;  %v416_v40 = vsub.f32 %v3589_v18, %v415_v27  ;;  %s2977_s22 = scalar_lea.hbm %s4212_s5, %s3183_s18  ;;  %s2960_s13 = scalar_lea.sflag [#allocation5], %s3546_s17 }
  0x36   : > { %v399_v37 = vand.u32 4294901760, %v398_v29  ;;  %444 = vmatpush.msra.mxu2 %v408_v16  ;;  %373 = vmatpush.msra.mxu0 %v3575_v9  ;;  %v405_v38 = vand.u32 4294901760, %v404_v30  ;;  %v583_v41 = vsub.f32 %v3602_v26, %v582_v33  ;;  %v594_v49 = vand.u32 4294901760, %v593_v43  ;;  %s2980_s9 = sshll.u32 %s2977_s22, 4  ;;  %s2981_s9 = int_to_ptr.hbm [resolvable:$true] %s2980_s9 }
  0x37   : > { %v3597_v23 = vsub.f32 %v352_v10, %v3586_v17  ;;  %473 = vmatpush.msra.mxu3 %v3575_v9  ;;  %v589_v42 = vsub.f32 %v3606_v28, %v588_v34  ;;  %v411_v45 = vand.u32 4294901760, %v410_v32  ;;  %v417_v50 = vand.u32 4294901760, %v416_v40  ;;  %s3330_s8 = sshra.s32 %s2981_s9, 4  ;;  %s3331_s8 = int_to_ptr.hbm [resolvable:$true] %s3330_s8 }
  0x38   : > { %496 = vmatpush.msrb.mxu0 %v397_v21  ;;  %400 = vmatpush.msra.mxu1 %v399_v37  ;;  %v584_v47 = vand.u32 4294901760, %v583_v41  ;;  %v595_v52 = vsub.f32 %v593_v43, %v594_v49  ;;  %v600_v53 = vand.u32 4294901760, %v599_v51  ;;  %p3337_p1 = scmp.lt.s32.totalorder %s3331_s8, %s4212_s5 }
  0x39   : > { %v3610_v31 = vand.u32 4294901760, %v3597_v23  ;;  %447 = vmatpush.msra.mxu2 %v3589_v18  ;;  %v590_v48 = vand.u32 4294901760, %v589_v42 }
  0x3a   : > { %450 = vmatmul.f32.vlgmr.msra.gmra.mxu2 %v3597_v23  ;;  %406 = vmatpush.msra.mxu1 %v405_v38  ;;  %v596_v54 = vand.u32 4294901760, %v595_v52  ;;  %v601_v55 = vsub.f32 %v599_v51, %v600_v53  ;;  %v346_v38 = vld [vmem:[%s3656_s14] sm:$0xff] }
  0x3b   : > { %v377_v39 = vsub.f32 %v3597_v23, %v3610_v31  ;;  %477 = vmatmul.f32.vlgmr.msra.gmra.mxu3 %v3610_v31  ;;  %552 = vmatpush.msrb.mxu2 %v3591_v19  ;;  %v786_v40 = vsel %vm784_vm1, %v346_v38, 0 }
  0x3c   : > { %585 = vmatpush.msrb.mxu3 %v584_v47  ;;  %412 = vmatpush.msra.mxu1 %v411_v45  ;;  %v602_v56 = vand.u32 4294901760, %v601_v55 }
  0x3d   : > { %v378_v44 = vand.u32 4294901760, %v377_v39  ;;  %500 = vmatpush.msrb.mxu0 %v403_v22  ;;  %554 = vmatpush.msrb.mxu2 %v3593_v20 }
  0x3e   : > { %591 = vmatpush.msrb.mxu3 %v590_v48  ;;  %418 = vmatpush.msra.mxu1 %v417_v50 }
  0x3f   : > { %379 = vmatmul.f32.vlgmr.msra.gmra.mxu0 %v378_v44  ;;  %420 = vmatmul.f32.vlgmr.msra.gmra.mxu1 %v3586_v17 }
  0x40   : > { %504 = vmatpush.msrb.mxu0 %v409_v24  ;;  %556 = vmatpush.msrb.mxu2 %v3615_v35 }
  0x41   : > { %527 = vmatpush.msrb.mxu1 %v3568_v3  ;;  %597 = vmatpush.msrb.mxu3 %v596_v54 }
  0x42   : > { %508 = vmatpush.msrb.mxu0 %v415_v27  ;;  %558 = vmatpush.msrb.mxu2 %v557_v46 }
  0x43   : > { %529 = vmatpush.msrb.mxu1 %v3570_v4  ;;  %603 = vmatpush.msrb.mxu3 %v602_v56 }
  0x44   : > { %564 = vmatmul.f32.vlgmr.msrb.gmra.mxu2 %v378_v44  ;;  %605 = vmatmul.f32.vlgmr.msrb.gmra.mxu3 %v3586_v17 }
  0x45   : > { %531 = vmatpush.msrb.mxu1 %v3572_v5  ;;  %623 = vmatpush.msra.mxu0 %v3602_v26 }
  0x46   : > { %681 = vmatpush.msra.mxu2 %v582_v33  ;;  %712 = vmatpush.msra.mxu3 %v3591_v19 }
  0x47   : > { %510 = vmatmul.f32.vlgmr.msrb.gmra.mxu0 %v3586_v17  ;;  %533 = vmatpush.msrb.mxu1 %v3575_v9 }
  0x48   : > { %626 = vmatpush.msra.mxu0 %v3606_v28  ;;  %685 = vmatpush.msra.mxu2 %v588_v34 }
  0x49   : > { %535 = vmatmul.f32.vlgmr.msrb.gmra.mxu1 %v3586_v17  ;;  %714 = vmatpush.msra.mxu3 %v3593_v20 }
  0x4a   : > { %629 = vmatpush.msra.mxu0 %v593_v43  ;;  %652 = vmatpush.msra.mxu1 %v3591_v19  ;;  %v3663_v43 = vand.u32 4294901760, %v786_v40 }
  0x4b   : > { %689 = vmatpush.msra.mxu2 %v594_v49  ;;  %716 = vmatpush.msra.mxu3 %v3615_v35 }
  0x4c   : > { %632 = vmatpush.msra.mxu0 %v599_v51  ;;  %654 = vmatpush.msra.mxu1 %v3593_v20  ;;  %v3667_v47 = vsub.f32 %v786_v40, %v3663_v43 }
  0x4d   : > { %693 = vmatpush.msra.mxu2 %v600_v53  ;;  %718 = vmatpush.msra.mxu3 %v557_v46 }
  0x4e   : > { %695 = vmatmul.f32.vlgmr.msra.gmra.mxu2 %v3586_v17  ;;  %656 = vmatpush.msra.mxu1 %v3615_v35  ;;  %v3670_v53 = vand.u32 4294901760, %v3667_v47 }
  0x4f   : > { %635 = vmatmul.f32.vlgmr.msra.gmra.mxu0 %v3597_v23  ;;  %720 = vmatmul.f32.vlgmr.msra.gmra.mxu3 %v3586_v17 }
  0x50   : > { %658 = vmatpush.msra.mxu1 %v557_v46 }
  0x51   : > { %662 = vmatmul.f32.vlgmr.msra.gmra.mxu1 %v3610_v31 }
  0xbc   : > { %v380_v57 = vpop.f32.mrf.mxu0  ;;  %v421_v58 = vpop.f32.mrf.mxu1 }
  0xbd   : > { %v451_v59 = vpop.f32.mrf.mxu2  ;;  %v422_v60 = vadd.f32 %v421_v58, %v380_v57  ;;  %v347_v57 = vld [vmem:[%s3656_s14 + $0x8] sm:$0xff] }
  0xbe   : > { %v478_v61 = vpop.f32.mrf.mxu3  ;;  %v789_v58 = vsel %vm784_vm1, %v347_v57, 0 }
  0xbf   : > { %v452_v62 = vadd.f32 %v451_v59, %v422_v60  ;;  %v348_v59 = vld [vmem:[%s3656_s14 + $0x10] sm:$0xff] }
  0xc1   : > { %v479_v0 = vadd.f32 %v478_v61, %v452_v62  ;;  %v817_v62 = vsub.f32 %v3667_v47, %v3670_v53 }
  0xc4   : > { %v511_v63 = vpop.f32.mrf.mxu0 }
  0xc5   : > { %v512_v1 = vadd.f32 %v511_v63, %v479_v0  ;;  %v3677_v63 = vand.u32 4294901760, %v789_v58 }
  0xc6   : > { %v536_v2 = vpop.f32.mrf.mxu1 }
  0xc7   : > { %v537_v3 = vadd.f32 %v536_v2, %v512_v1  ;;  %v565_v4 = vpop.f32.mrf.mxu2  ;;  %v606_v5 = vpop.f32.mrf.mxu3  ;;  %v792_v1 = vsel %vm784_vm1, %v348_v59, 0 }
  0xc8   : > { %v607_v7 = vadd.f32 %v606_v5, %v565_v4  ;;  %v3683_v5 = vand.u32 4294901760, %v817_v62 }
  0xc9   : > { %v724_v6 = vrot.slane %v537_v3, 4 }
  0xcb   : > { %v725_v9 = vmax.f32 %v537_v3, %v724_v6 }
  0xcc   : > { %v636_v8 = vpop.f32.mrf.mxu0 }
  0xcd   : > { %v726_v10 = vrot.slane %v725_v9, 2  ;;  %v637_v12 = vadd.f32 %v636_v8, %v607_v7  ;;  %v3688_v7 = vand.u32 4294901760, %v792_v1 }
  0xce   : > { %v663_v13 = vpop.f32.mrf.mxu1 }
  0xcf   : > { %v727_v14 = vmax.f32 %v725_v9, %v726_v10  ;;  %v664_v15 = vadd.f32 %v663_v13, %v637_v12  ;;  %v349_v12 = vld [vmem:[%s3656_s14 + $0x18] sm:$0xff] }
  0xd1   : > { %v728_v16 = vrot.slane %v727_v14, 1  ;;  %v696_v17 = vpop.f32.mrf.mxu2 }
  0xd2   : > { %v697_v18 = vadd.f32 %v696_v17, %v664_v15  ;;  %v721_v20 = vpop.f32.mrf.mxu3 }
  0xd3   : > { %v729_v19 = vmax.f32 %v727_v14, %v728_v16  ;;  %v3696_v16 = vsub.f32 %v792_v1, %v3688_v7 }
  0xd4   : > { %v722_v21 = vadd.f32 %v721_v20, %v697_v18 }
  0xd5   : > { %v736_v22 = vsub.f32 %v537_v3, %v729_v19  ;;  %v3681_v3 = vsub.f32 %v789_v58, %v3677_v63  ;;  %v795_v19 = vsel %vm784_vm1, %v349_v12, 0 }
  0xd6   : > { %v730_v23 = vrot.slane %v722_v21, 4 }
  0xd7   : > { %v738_v24 = vmul.f32 1.442695, %v736_v22  ;;  %v3686_v6 = vand.u32 4294901760, %v3681_v3 }
  0xd8   : > { %v731_v25 = vmax.f32 %v722_v21, %v730_v23 }
  0xd9   : > { %3242 = vpow2.f32 %v738_v24  ;;  %v825_v15 = vsub.f32 %v3681_v3, %v3686_v6 }
  0xda   : > { %v732_v26 = vrot.slane %v731_v25, 2 }
  0xdb   : > { %v826_v24 = vand.u32 4294901760, %v825_v15 }
  0xdc   : > { %v733_v27 = vmax.f32 %v731_v25, %v732_v26  ;;  %v3701_v25 = vand.u32 4294901760, %v3696_v16  ;;  %v3703_v26 = vand.u32 4294901760, %v795_v19 }
  0xde   : > { %v734_v28 = vrot.slane %v733_v27, 1 }
  0xdf   : > { %v3243_v29 = vpop.eup %3242 }
  0xe0   : > { %v742_v30 = vrot.slane %v3243_v29, 4  ;;  %v735_v31 = vmax.f32 %v733_v27, %v734_v28 }
  0xe2   : > { %v743_v32 = vadd.f32 %v3243_v29, %v742_v30  ;;  %v737_v33 = vsub.f32 %v722_v21, %v735_v31 }
  0xe4   : > { %v744_v34 = vrot.slane %v743_v32, 2  ;;  %v740_v35 = vmul.f32 1.442695, %v737_v33  ;;  %v833_v33 = vsub.f32 %v3696_v16, %v3701_v25 }
  0xe6   : > { %v745_v36 = vadd.f32 %v744_v34, %v743_v32  ;;  %3244 = vpow2.f32 %v740_v35  ;;  %v839_v34 = vsub.f32 %v795_v19, %v3703_v26  ;;  %v834_v38 = vand.u32 4294901760, %v833_v33 }
  0xe8   : > { %v746_v37 = vrot.slane %v745_v36, 1 }
  0xea   : > { %v747_v39 = vadd.f32 %v746_v37, %v745_v36 }
  0xec   : > { %v3660_v41 = vpop.eup %3244  ;;  %3246 = vrcp.f32 %v747_v39  ;;  %v765_v52 = vand.u32 2147483648, %v747_v39  ;;  %v763_v56 = vand.u32 2147483647, %v747_v39  ;;  %vm759_vm3 = vweird.f32 %v747_v39 }
  0xed   : > { %v748_v42 = vrot.slane %v3660_v41, 4 }
  0xee   : > { %v766_v61 = vor.u32 1.1754944e-38, %v765_v52  ;;  %vm764_vm5 = vcmp.eq.f32.partialorder %v763_v56, 8.507059e+37 }
  0xef   : > { %v749_v44 = vadd.f32 %v3660_v41, %v748_v42 }
  0xf1   : > { %v750_v45 = vrot.slane %v749_v44, 2 }
  0xf2   : > { %v3247_v46 = vpop.eup %3246 }
  0xf3   : > { %v751_v48 = vadd.f32 %v750_v45, %v749_v44  ;;  %v755_v49 = vmul.f32 %v3247_v46, %v747_v39  ;;  %vm760_vm2 = vweird.f32 %v3247_v46  ;;  %v840_v39 = vand.u32 4294901760, %v839_v34 }
  0xf4   : > { %vm761_vm4 = vmor %vm759_vm3, %vm760_vm2 }
  0xf5   : > { %v752_v50 = vrot.slane %v751_v48, 1  ;;  %v756_v51 = vsub.f32 1.0, %v755_v49  ;;  %v841_v42 = vsub.f32 %v839_v34, %v840_v39 }
  0xf7   : > { %v753_v54 = vadd.f32 %v752_v50, %v751_v48  ;;  %v757_v55 = vmul.f32 %v3247_v46, %v756_v51  ;;  %v842_v49 = vand.u32 4294901760, %v841_v42 }
  0xf9   : > { %3248 = vrcp.f32 %v753_v54  ;;  %v758_v60 = vadd.f32 %v3247_v46, %v757_v55  ;;  %v780_v18 = vand.u32 2147483648, %v753_v54  ;;  %v778_v21 = vand.u32 2147483647, %v753_v54 }
  0xfa   : > { %vm774_vm7 = vweird.f32 %v753_v54 }
  0xfb   : > { %v762_v0 = vsel %vm761_vm4, %v3247_v46, %v758_v60  ;;  %v781_v28 = vor.u32 1.1754944e-38, %v780_v18  ;;  %vm779_vm9 = vcmp.eq.f32.partialorder %v778_v21, 8.507059e+37  ;;  %v3150_v21 = vld [vmem:[%s3552_s29 + $0x60] sm:$0xff] }
  0xfc   : > { %v767_v2 = vsel %vm764_vm5, %v766_v61, %v762_v0 }
  0xfd   : > { %v768_v4 = vmul.f32 %v3243_v29, %v767_v2 }
  0xff   : > { %v3249_v8 = vpop.eup %3248  ;;  %v812_v9 = vand.u32 4294901760, %v768_v4  ;;  %v1283_v31 = vmul.f32 1.442695, %v768_v4 }
 0x100   : > { %v770_v10 = vmul.f32 %v3249_v8, %v753_v54  ;;  %vm775_vm6 = vweird.f32 %v3249_v8 }
 0x101   : > { %813 = vmatpush.msrb.mxu0 %v812_v9  ;;  %940 = vmatpush.msrb.mxu3 %v812_v9  ;;  %v863_v13 = vsub.f32 %v768_v4, %v812_v9  ;;  %vm776_vm8 = vmor %vm774_vm7, %vm775_vm6  ;;  %3250 = vpow2.f32 %v1283_v31  ;;  %vm1643_vm6 = vcmask 1040384  }
 0x102   : > { %v771_v14 = vsub.f32 1.0, %v770_v10  ;;  %819 = vmatmul.f32.vlgmr.msrb.gmra.mxu0 %v3683_v5  ;;  %944 = vmatmul.f32.vlgmr.msrb.gmra.mxu3 %v3670_v53  ;;  %v3152_v10 = vld [vmem:[%s3552_s29 + $0x70] sm:$0xff] }
 0x103   : > { %902 = vmatpush.msrb.mxu2 %v863_v13  ;;  %v864_v17 = vand.u32 4294901760, %v863_v13 }
 0x104   : > { %v772_v20 = vmul.f32 %v3249_v8, %v771_v14  ;;  %905 = vmatmul.f32.vlgmr.msrb.gmra.mxu2 %v3667_v47 }
 0x105   : > { %984 = vmatpush.msra.mxu0 %v864_v17  ;;  %v865_v22 = vsub.f32 %v863_v13, %v864_v17 }
 0x106   : > { %v773_v23 = vadd.f32 %v3249_v8, %v772_v20  ;;  %v3787_v20 = vand.u32 4294901760, %v3152_v10 }
 0x107   : > { %v866_v27 = vand.u32 4294901760, %v865_v22  ;;  %v3712_v44 = vpop.eup %3250 }
 0x108   : > { %v777_v29 = vsel %vm776_vm8, %v3249_v8, %v773_v23 }
 0x109   : > { %867 = vmatpush.msrb.mxu1 %v866_v27  ;;  %v782_v30 = vsel %vm779_vm9, %v781_v28, %v777_v29  ;;  %v3153_v27 = vld [vmem:[%s3552_s29 + $0x78] sm:$0xff] }
 0x10a   : > { %v783_v32 = vmul.f32 %v3660_v41, %v782_v30  ;;  %827 = vmatmul.f32.gmra.mxu0 %v826_v24  ;;  %869 = vmatmul.f32.vlgmr.msrb.gmra.mxu1 %v3663_v43  ;;  %v3797_v30 = vsub.f32 %v3152_v10, %v3787_v20 }
 0x10b   : > { %1018 = vmatpush.msra.mxu1 %v812_v9  ;;  %950 = vmatmul.f32.gmra.mxu3 %v3686_v6 }
 0x10c   : > { %v1051_v35 = vand.u32 4294901760, %v783_v32  ;;  %v1285_v36 = vmul.f32 1.442695, %v783_v32  ;;  %910 = vmatmul.f32.gmra.mxu2 %v3681_v3 }
 0x10e   : > { %1052 = vmatpush.msra.mxu2 %v1051_v35  ;;  %1179 = vmatpush.msrb.mxu1 %v1051_v35  ;;  %v1102_v37 = vsub.f32 %v783_v32, %v1051_v35  ;;  %3252 = vpow2.f32 %v1285_v36 }
 0x110   : > { %1141 = vmatpush.msrb.mxu0 %v1102_v37  ;;  %v1103_v40 = vand.u32 4294901760, %v1102_v37 }
 0x112   : > { %1223 = vmatpush.msrb.mxu2 %v1103_v40  ;;  %v1104_v41 = vsub.f32 %v1102_v37, %v1103_v40  ;;  %835 = vmatmul.f32.gmra.mxu0 %v834_v38 }
 0x113   : > { %873 = vmatmul.f32.gmra.mxu1 %v3677_v63  ;;  %956 = vmatmul.f32.gmra.mxu3 %v3701_v25 }
 0x114   : > { %v3716_v45 = vpop.eup %3252  ;;  %v1105_v46 = vand.u32 4294901760, %v1104_v41  ;;  %915 = vmatmul.f32.gmra.mxu2 %v3696_v16  ;;  %v3814_v41 = vand.u32 4294901760, %v3577_v11 }
 0x115   : > { %v1287_v48 = vadd.f32 %v3716_v45, %v3712_v44 }
 0x116   : > { %1106 = vmatpush.msra.mxu3 %v1105_v46 }
 0x117   : > { %1288 = vadd.xlane.f32.xlu0 %v1287_v48  ;;  %v1713_v48 = vand.u32 4294901760, %v3797_v30 }
 0x118   : > { %1257 = vmatpush.msrb.mxu3 %v1051_v35 }
 0x11a   : > { %843 = vmatmul.f32.gmra.mxu0 %v842_v49 }
 0x11b   : > { %877 = vmatmul.f32.gmra.mxu1 %v3688_v7  ;;  %962 = vmatmul.f32.gmra.mxu3 %v840_v39 }
 0x11c   : > { %920 = vmatmul.f32.gmra.mxu2 %v839_v34 }
 0x122   : > { %986 = vmatmul.f32.vlgmr.msra.gmra.mxu0 %v3663_v43 }
 0x123   : > { %881 = vmatmul.f32.gmra.mxu1 %v3703_v26  ;;  %1108 = vmatmul.f32.vlgmr.msra.gmra.mxu3 %v3663_v43 }
 0x124   : > { %1058 = vmatmul.f32.vlgmr.msra.gmra.mxu2 %v3683_v5 }
 0x12a   : > { %990 = vmatmul.f32.gmra.mxu0 %v3677_v63 }
 0x12b   : > { %1020 = vmatmul.f32.vlgmr.msra.gmra.mxu1 %v3663_v43  ;;  %1112 = vmatmul.f32.gmra.mxu3 %v3677_v63 }
 0x12c   : > { %1066 = vmatmul.f32.gmra.mxu2 %v826_v24 }
 0x132   : > { %994 = vmatmul.f32.gmra.mxu0 %v3688_v7 }
 0x133   : > { %1024 = vmatmul.f32.gmra.mxu1 %v3677_v63  ;;  %1116 = vmatmul.f32.gmra.mxu3 %v3688_v7 }
 0x134   : > { %1074 = vmatmul.f32.gmra.mxu2 %v834_v38  ;;  %v3807_v38 = vand.u32 4294901760, %v3153_v27 }
 0x13a   : > { %998 = vmatmul.f32.gmra.mxu0 %v3703_v26 }
 0x13b   : > { %1028 = vmatmul.f32.gmra.mxu1 %v3688_v7  ;;  %1120 = vmatmul.f32.gmra.mxu3 %v3703_v26 }
 0x13c   : > { %1082 = vmatmul.f32.gmra.mxu2 %v842_v49 }
 0x142   : > { %1144 = vmatmul.f32.vlgmr.msrb.gmra.mxu0 %v3667_v47 }
 0x143   : > { %1032 = vmatmul.f32.gmra.mxu1 %v3703_v26  ;;  %1259 = vmatmul.f32.vlgmr.msrb.gmra.mxu3 %v3663_v43 }
 0x144   : > { %1225 = vmatmul.f32.vlgmr.msrb.gmra.mxu2 %v3663_v43  ;;  %v336_v43 = vld [vmem:[%s4210_s3] sm:$0x1] }
 0x145   : > { %v1308_v50 = vsel %vm784_vm1, %v336_v43, 0 }
 0x146   : > { %v3756_v55 = vand.u32 4294901760, %v1308_v50 }
 0x148   : > { %v3759_v57 = vsub.f32 %v1308_v50, %v3756_v55 }
 0x14a   : > { %1149 = vmatmul.f32.gmra.mxu0 %v3681_v3  ;;  %v3770_v1 = vand.u32 4294901760, %v3759_v57 }
 0x14b   : > { %1183 = vmatmul.f32.vlgmr.msrb.gmra.mxu1 %v3670_v53  ;;  %1263 = vmatmul.f32.gmra.mxu3 %v3677_v63 }
 0x14c   : > { %1229 = vmatmul.f32.gmra.mxu2 %v3677_v63 }
 0x152   : > { %1154 = vmatmul.f32.gmra.mxu0 %v3696_v16 }
 0x153   : > { %1189 = vmatmul.f32.gmra.mxu1 %v3686_v6  ;;  %1267 = vmatmul.f32.gmra.mxu3 %v3688_v7  ;;  %v1330_v6 = vsub.f32 %v3759_v57, %v3770_v1 }
 0x154   : > { %1233 = vmatmul.f32.gmra.mxu2 %v3688_v7 }
 0x155   : > { %v3785_v17 = vand.u32 4294901760, %v1330_v6 }
 0x15a   : > { %1159 = vmatmul.f32.gmra.mxu0 %v839_v34  ;;  %v3146_v34 = vld [vmem:[%s3552_s29 + $0x40] sm:$0xff] }
 0x15b   : > { %1195 = vmatmul.f32.gmra.mxu1 %v3701_v25  ;;  %1271 = vmatmul.f32.gmra.mxu3 %v3703_v26  ;;  %v3148_v25 = vld [vmem:[%s3552_s29 + $0x50] sm:$0xff]  ;;  %v3821_v49 = vand.u32 4294901760, %v3146_v34 }
 0x15c   : > { %1237 = vmatmul.f32.gmra.mxu2 %v3703_v26  ;;  %v3793_v26 = vand.u32 4294901760, %v3150_v21  ;;  %v3801_v33 = vand.u32 4294901760, %v3148_v25 }
 0x15e   : > { %v3817_v42 = vsub.f32 %v3150_v21, %v3793_v26  ;;  %v3827_v50 = vsub.f32 %v3148_v25, %v3801_v33 }
 0x163   : > { %1201 = vmatmul.f32.gmra.mxu1 %v840_v39 }
 0x17f   : > { %v820_v51 = vpop.f32.mrf.mxu0 }
 0x185   : > { %v3754_v54 = vpop.f32.mrf.mxu3 }
 0x187   : > { %v870_v52 = vpop.f32.mrf.mxu1  ;;  %v906_v53 = vpop.f32.mrf.mxu2 }
 0x188   : > { %v3761_v59 = vpop.f32.mrf.mxu0  ;;  %v871_v22 = vadd.f32 %v870_v52, %v820_v51  ;;  %v3149_v51 = vld [vmem:[%s3552_s29 + $0x58] sm:$0xff]  ;;  %v3831_v52 = vsub.f32 %v3153_v27, %v3807_v38 }
 0x18a   : > { %v1289_v47 = vpop.xlane.xlu0 %1288  ;;  %v907_v32 = vadd.f32 %v906_v53, %v871_v22 }
 0x18b   : > { %3254 = vrcp.f32 %v1289_v47  ;;  %v1301_v0 = vand.u32 2147483648, %v1289_v47  ;;  %v1299_v3 = vand.u32 2147483647, %v1289_v47  ;;  %vm1295_vm11 = vweird.f32 %v1289_v47 }
 0x18c   : > { %v946_v43 = vadd.f32 %v3754_v54, %v907_v32  ;;  %v3147_v54 = vld [vmem:[%s3552_s29 + $0x48] sm:$0xff] }
 0x18d   : > { %v1302_v5 = vor.u32 1.1754944e-38, %v1301_v0  ;;  %vm1300_vm13 = vcmp.eq.f32.partialorder %v1299_v3, 8.507059e+37 }
 0x18e   : > { %v3767_v63 = vpop.f32.mrf.mxu3 }
 0x18f   : > { %v3765_v62 = vpop.f32.mrf.mxu2 }
 0x190   : > { %v3763_v60 = vpop.f32.mrf.mxu1  ;;  %v3774_v8 = vpop.f32.mrf.mxu0 }
 0x191   : > { %v3255_v56 = vpop.eup %3254 }
 0x192   : > { %v1291_v58 = vmul.f32 %v3255_v56, %v1289_v47  ;;  %vm1296_vm10 = vweird.f32 %v3255_v56  ;;  %v875_v47 = vadd.f32 %v3763_v60, %v3761_v59  ;;  %v1714_v59 = vsub.f32 %v3797_v30, %v1713_v48 }
 0x193   : > { %vm1297_vm12 = vmor %vm1295_vm11, %vm1296_vm10  ;;  %v3847_v60 = vsub.f32 %v3146_v34, %v3821_v49 }
 0x194   : > { %v1292_v61 = vsub.f32 1.0, %v1291_v58  ;;  %v3840_v58 = vsub.f32 %v3577_v11, %v3814_v41  ;;  %v1725_v11 = vand.u32 4294901760, %v3827_v50 }
 0x196   : > { %v1293_v2 = vmul.f32 %v3255_v56, %v1292_v61  ;;  %v3783_v16 = vpop.f32.mrf.mxu3  ;;  %v3849_v61 = vand.u32 4294901760, %v3149_v51 }
 0x197   : > { %v3781_v15 = vpop.f32.mrf.mxu2 }
 0x198   : > { %v1294_v4 = vadd.f32 %v3255_v56, %v1293_v2  ;;  %v3777_v12 = vpop.f32.mrf.mxu1  ;;  %v3799_v31 = vpop.f32.mrf.mxu0  ;;  %v912_v2 = vadd.f32 %v3765_v62, %v875_v47  ;;  %v3877_v21 = vsub.f32 %v3149_v51, %v3849_v61 }
 0x19a   : > { %v1298_v7 = vsel %vm1297_vm12, %v3255_v56, %v1294_v4  ;;  %v1719_v56 = vand.u32 4294901760, %v3817_v42  ;;  %v952_v22 = vadd.f32 %v3767_v63, %v912_v2 }
 0x19b   : > { %v1303_v9 = vsel %vm1300_vm13, %v1302_v5, %v1298_v7  ;;  %v1898_v5 = vand.u32 4294901760, %v3831_v52  ;;  %v3860_v7 = vand.u32 4294901760, %v3147_v54 }
 0x19c   : > { %v1304_v13 = vmul.f32 %v3712_v44, %v1303_v9  ;;  %v1305_v14 = vmul.f32 %v3716_v45, %v1303_v9  ;;  %v3151_v44 = vld [vmem:[%s3552_s29 + $0x68] sm:$0xff]  ;;  %v1720_v62 = vsub.f32 %v3817_v42, %v1719_v56  ;;  %s4026_s29 = scalar_lea.vmem [#allocation7], %s3138_s27 }
 0x19d   : > { %v3833_v53 = vand.u32 4294901760, %v3151_v44  ;;  %v1899_v63 = vsub.f32 %v3831_v52, %v1898_v5  ;;  %v3898_v27 = vsub.f32 %v3147_v54, %v3860_v7 }
 0x19e   : > { %v1325_v18 = vand.u32 4294901760, %v1304_v13  ;;  %v1471_v19 = vand.u32 4294901760, %v1305_v14  ;;  %v3811_v40 = vpop.f32.mrf.mxu3 }
 0x19f   : > { %v3809_v39 = vpop.f32.mrf.mxu2  ;;  %v3858_v6 = vsub.f32 %v3151_v44, %v3833_v53 }
 0x1a0   : > { %1326 = vmatpush.msra.mxu0 %v1325_v18  ;;  %1402 = vmatpush.msra.mxu3 %v1325_v18  ;;  %v1352_v23 = vsub.f32 %v1304_v13, %v1325_v18  ;;  %v1498_v24 = vsub.f32 %v1305_v14, %v1471_v19  ;;  %v3804_v35 = vpop.f32.mrf.mxu1  ;;  %v987_v0 = vpop.f32.mrf.mxu0  ;;  %v1715_v14 = vand.u32 4294901760, %v1714_v59 }
 0x1a1   : > { %1332 = vmatmul.f32.vlgmr.msra.gmra.mxu0 %v3785_v17  ;;  %1406 = vmatmul.f32.vlgmr.msra.gmra.mxu3 %v3770_v1  ;;  %v988_v3 = vadd.f32 %v987_v0, %v946_v43  ;;  %v1904_v25 = vand.u32 4294901760, %v3858_v6  ;;  %v1916_v43 = vand.u32 4294901760, %v3898_v27 }
 0x1a2   : > { %1379 = vmatpush.msra.mxu2 %v1352_v23  ;;  %v1353_v28 = vand.u32 4294901760, %v1352_v23  ;;  %v1499_v29 = vand.u32 4294901760, %v1498_v24 }
 0x1a3   : > { %1382 = vmatmul.f32.vlgmr.msra.gmra.mxu2 %v3759_v57 }
 0x1a4   : > { %1472 = vmatpush.msrb.mxu2 %v1471_v19  ;;  %1428 = vmatpush.msrb.mxu0 %v1353_v28  ;;  %v1354_v36 = vsub.f32 %v1352_v23, %v1353_v28  ;;  %v1500_v37 = vsub.f32 %v1498_v24, %v1499_v29  ;;  %v879_v23 = vadd.f32 %v3777_v12, %v3774_v8  ;;  %v1721_v8 = vand.u32 4294901760, %v1720_v62 }
 0x1a6   : > { %1574 = vmatpush.msra.mxu2 %v1499_v29  ;;  %1525 = vmatpush.msra.mxu0 %v1498_v24  ;;  %v1355_v45 = vand.u32 4294901760, %v1354_v36  ;;  %v1501_v46 = vand.u32 4294901760, %v1500_v37  ;;  %v3869_v13 = vpop.f32.mrf.mxu3  ;;  %v1726_v24 = vsub.f32 %v3827_v50, %v1725_v11  ;;  %v1910_v29 = vand.u32 4294901760, %v3877_v21 }
 0x1a7   : > { %v3862_v9 = vpop.f32.mrf.mxu2  ;;  %v917_v34 = vadd.f32 %v3781_v15, %v879_v23 }
 0x1a8   : > { %1356 = vmatpush.msra.mxu1 %v1355_v45  ;;  %1502 = vmatpush.msrb.mxu3 %v1501_v46  ;;  %v1021_v4 = vpop.f32.mrf.mxu1  ;;  %v991_v32 = vpop.f32.mrf.mxu0  ;;  %v1727_v36 = vand.u32 4294901760, %v1726_v24  ;;  %v1900_v45 = vand.u32 4294901760, %v1899_v63  ;;  %v1905_v46 = vsub.f32 %v3858_v6, %v1904_v25  ;;  %v1911_v0 = vsub.f32 %v3877_v21, %v1910_v29 }
 0x1a9   : > { %1358 = vmatmul.f32.vlgmr.msra.gmra.mxu1 %v3756_v55  ;;  %1430 = vmatmul.f32.vlgmr.msrb.gmra.mxu0 %v3756_v55  ;;  %v1022_v10 = vadd.f32 %v1021_v4, %v988_v3  ;;  %v992_v37 = vadd.f32 %v991_v32, %v952_v22  ;;  %v958_v2 = vadd.f32 %v3783_v16, %v917_v34 }
 0x1aa   : > { %1596 = vmatpush.msra.mxu3 %v1471_v19  ;;  %1450 = vmatpush.msrb.mxu1 %v1325_v18  ;;  %v3873_v18 = vand.u32 4294901760, %v3840_v58  ;;  %v883_v3 = vadd.f32 %v3804_v35, %v3799_v31  ;;  %v1912_v16 = vand.u32 4294901760, %v1911_v0 }
 0x1ab   : > { %1504 = vmatmul.f32.vlgmr.msrb.gmra.mxu3 %v3756_v55  ;;  %1478 = vmatmul.f32.vlgmr.msrb.gmra.mxu2 %v3785_v17  ;;  %1275 = vst [vmem:[%s3889_s16] sm:$0xff] %v1022_v10 }
 0x1ac   : > { %1548 = vmatpush.msra.mxu1 %v1471_v19  ;;  %1683 = vmatpush.msrb.mxu0 %v3787_v20  ;;  %v1731_v19 = vand.u32 4294901760, %v3847_v60  ;;  %v1693_v12 = vsub.f32 %v3840_v58, %v3873_v18  ;;  %v922_v31 = vadd.f32 %v3809_v39, %v883_v3 }
 0x1ad   : > { %1754 = vmatpush.msrb.mxu2 %v3797_v30  ;;  %1783 = vmatpush.msrb.mxu3 %v3787_v20  ;;  %v1906_v30 = vand.u32 4294901760, %v1905_v46 }
 0x1ae   : > { %1685 = vmatpush.msrb.mxu0 %v3793_v26  ;;  %v1732_v28 = vsub.f32 %v3847_v60, %v1731_v19  ;;  %v3921_v51 = vpop.f32.mrf.mxu3  ;;  %v1694_v54 = vand.u32 4294901760, %v1693_v12  ;;  %v964_v39 = vadd.f32 %v3811_v40, %v922_v31 }
 0x1af   : > { %1757 = vmatpush.msrb.mxu2 %v3817_v42  ;;  %1785 = vmatpush.msrb.mxu3 %v3793_v26  ;;  %v3918_v47 = vpop.f32.mrf.mxu2 }
 0x1b0   : > { %1687 = vmatpush.msrb.mxu0 %v3801_v33  ;;  %v1025_v44 = vpop.f32.mrf.mxu1  ;;  %v1733_v59 = vand.u32 4294901760, %v1732_v28  ;;  %v995_v4 = vpop.f32.mrf.mxu0 }
 0x1b1   : > { %1452 = vmatmul.f32.vlgmr.msrb.gmra.mxu1 %v3756_v55  ;;  %1760 = vmatpush.msrb.mxu2 %v3827_v50  ;;  %v1026_v15 = vadd.f32 %v1025_v44, %v992_v37  ;;  %v996_v35 = vadd.f32 %v995_v4, %v958_v2 }
 0x1b2   : > { %1528 = vmatmul.f32.vlgmr.msra.gmra.mxu0 %v3759_v57  ;;  %1716 = vmatpush.msrb.mxu1 %v1715_v14 }
 0x1b3   : > { %1598 = vmatmul.f32.vlgmr.msra.gmra.mxu3 %v3756_v55  ;;  %1689 = vmatpush.msrb.mxu0 %v3821_v49  ;;  %1277 = vst [vmem:[%s3889_s16 + $0x10] sm:$0xff] %v1026_v15 }
 0x1b4   : > { %1576 = vmatmul.f32.vlgmr.msra.gmra.mxu2 %v3756_v55  ;;  %1787 = vmatpush.msrb.mxu3 %v3801_v33 }
 0x1b5   : > { %1722 = vmatpush.msrb.mxu1 %v1721_v8  ;;  %1763 = vmatpush.msrb.mxu2 %v3847_v60 }
 0x1b6   : > { %1789 = vmatpush.msrb.mxu3 %v3821_v49  ;;  %1812 = vmatpush.msra.mxu0 %v1713_v48  ;;  %v1917_v48 = vsub.f32 %v3898_v27, %v1916_v43  ;;  %v1117_v14 = vpop.f32.mrf.mxu3 }
 0x1b7   : > { %1728 = vmatpush.msrb.mxu1 %v1727_v36  ;;  %1868 = vmatpush.msra.mxu2 %v3807_v38  ;;  %v3946_v62 = vpop.f32.mrf.mxu2 }
 0x1b8   : > { %1901 = vmatpush.msra.mxu3 %v1900_v45  ;;  %1816 = vmatpush.msra.mxu0 %v1719_v56  ;;  %v1029_v42 = vpop.f32.mrf.mxu1  ;;  %v1918_v56 = vand.u32 4294901760, %v1917_v48 }
 0x1b9   : > { %1552 = vmatmul.f32.vlgmr.msra.gmra.mxu1 %v3770_v1  ;;  %1870 = vmatpush.msra.mxu2 %v3833_v53  ;;  %v1030_v10 = vadd.f32 %v1029_v42, %v996_v35 }
 0x1ba   : > { %1695 = vmatmul.f32.vlgmr.msrb.gmra.mxu0 %v1694_v54  ;;  %1734 = vmatpush.msrb.mxu1 %v1733_v59 }
 0x1bb   : > { %1793 = vmatmul.f32.vlgmr.msrb.gmra.mxu3 %v3873_v18  ;;  %1820 = vmatpush.msra.mxu0 %v1725_v11  ;;  %1279 = vst [vmem:[%s3889_s16 + $0x20] sm:$0xff] %v1030_v10 }
 0x1bc   : > { %1766 = vmatmul.f32.vlgmr.msrb.gmra.mxu2 %v3840_v58  ;;  %1907 = vmatpush.msra.mxu3 %v1906_v30 }
 0x1bd   : > { %1843 = vmatpush.msra.mxu1 %v3787_v20  ;;  %1872 = vmatpush.msra.mxu2 %v3849_v61  ;;  %v999_v20 = vpop.f32.mrf.mxu0 }
 0x1be   : > { %1913 = vmatpush.msra.mxu3 %v1912_v16  ;;  %1824 = vmatpush.msra.mxu0 %v1731_v19  ;;  %v1121_v60 = vpop.f32.mrf.mxu3 }
 0x1bf   : > { %1845 = vmatpush.msra.mxu1 %v3793_v26  ;;  %1874 = vmatpush.msra.mxu2 %v3860_v7  ;;  %v1000_v26 = vadd.f32 %v999_v20, %v964_v39  ;;  %v1083_v50 = vpop.f32.mrf.mxu2 }
 0x1c0   : > { %1919 = vmatpush.msra.mxu3 %v1918_v56  ;;  %1939 = vmatpush.msrb.mxu0 %v3831_v52  ;;  %v1033_v40 = vpop.f32.mrf.mxu1 }
 0x1c1   : > { %1736 = vmatmul.f32.vlgmr.msrb.gmra.mxu1 %v3814_v41  ;;  %1997 = vmatpush.msrb.mxu2 %v1898_v5  ;;  %v1034_v52 = vadd.f32 %v1033_v40, %v1000_v26 }
 0x1c2   : > { %1826 = vmatmul.f32.vlgmr.msra.gmra.mxu0 %v3814_v41  ;;  %1847 = vmatpush.msra.mxu1 %v3801_v33  ;;  %v1110_v33 = vadd.f32 %v3869_v13, %v3862_v9 }
 0x1c3   : > { %1921 = vmatmul.f32.vlgmr.msra.gmra.mxu3 %v3814_v41  ;;  %1942 = vmatpush.msrb.mxu0 %v3858_v6  ;;  %1281 = vst [vmem:[%s3889_s16 + $0x30] sm:$0xff] %v1034_v52 }
 0x1c4   : > { %1880 = vmatmul.f32.vlgmr.msra.gmra.mxu2 %v1694_v54  ;;  %1849 = vmatpush.msra.mxu1 %v3821_v49  ;;  %v3996_v54 = vstv %s335_s19  ;;  %s3336_s19 = scalar_lea.hbm %s4212_s5, 256 }
 0x1c5   : > { %2001 = vmatpush.msrb.mxu2 %v1904_v25  ;;  %2028 = vmatpush.msrb.mxu3 %v3807_v38 }
 0x1c6   : > { %1945 = vmatpush.msrb.mxu0 %v3877_v21  ;;  %1968 = vmatpush.msrb.mxu1 %v3807_v38  ;;  %v1145_v38 = vpop.f32.mrf.mxu0  ;;  %v1260_v6 = vpop.f32.mrf.mxu3 }
 0x1c7   : > { %2005 = vmatpush.msrb.mxu2 %v1910_v29  ;;  %2030 = vmatpush.msrb.mxu3 %v3833_v53  ;;  %v1146_v49 = vadd.f32 %v1145_v38, %v1110_v33  ;;  %v1122_v29 = vadd.f32 %v1121_v60, %v1083_v50 }
 0x1c8   : > { %1948 = vmatpush.msrb.mxu0 %v3898_v27  ;;  %1970 = vmatpush.msrb.mxu1 %v3833_v53  ;;  %v1184_v11 = vpop.f32.mrf.mxu1  ;;  %v1226_v53 = vpop.f32.mrf.mxu2 }
 0x1c9   : > { %1851 = vmatmul.f32.vlgmr.msra.gmra.mxu1 %v3814_v41  ;;  %2009 = vmatpush.msrb.mxu2 %v1916_v43  ;;  %v1185_v5 = vadd.f32 %v1184_v11, %v1146_v49 }
 0x1ca   : > { %2032 = vmatpush.msrb.mxu3 %v3849_v61  ;;  %1951 = vmatmul.f32.vlgmr.msrb.gmra.mxu0 %v3840_v58  ;;  %v1114_v58 = vadd.f32 %v3921_v51, %v3918_v47 }
 0x1cb   : > { %1972 = vmatpush.msrb.mxu1 %v3849_v61  ;;  %v1227_v9 = vadd.f32 %v1226_v53, %v1185_v5 }
 0x1cc   : > { %2011 = vmatmul.f32.vlgmr.msrb.gmra.mxu2 %v3814_v41  ;;  %2034 = vmatpush.msrb.mxu3 %v3860_v7 }
 0x1cd   : > { %2036 = vmatmul.f32.vlgmr.msrb.gmra.mxu3 %v3814_v41  ;;  %1974 = vmatpush.msrb.mxu1 %v3860_v7  ;;  %v1261_v61 = vadd.f32 %v1260_v6, %v1227_v9  ;;  %v1118_v7 = vadd.f32 %v1117_v14, %v3946_v62 }
 0x1ce   : > { %v1150_v13 = vpop.f32.mrf.mxu0  ;;  %v1264_v41 = vpop.f32.mrf.mxu3 }
 0x1cf   : > { %1276 = vst [vmem:[%s3889_s16 + $0x8] sm:$0xff] %v1261_v61  ;;  %v1151_v19 = vadd.f32 %v1150_v13, %v1114_v58 }
 0x1d0   : > { %v1190_v21 = vpop.f32.mrf.mxu1  ;;  %v1230_v22 = vpop.f32.mrf.mxu2 }
 0x1d1   : > { %1978 = vmatmul.f32.vlgmr.msrb.gmra.mxu1 %v3873_v18  ;;  %v1191_v23 = vadd.f32 %v1190_v21, %v1151_v19 }
 0x1d3   : > { %v1231_v24 = vadd.f32 %v1230_v22, %v1191_v23 }
 0x1d5   : > { %v1265_v63 = vadd.f32 %v1264_v41, %v1231_v24 }
 0x1d6   : > { %v1155_v25 = vpop.f32.mrf.mxu0  ;;  %v1268_v28 = vpop.f32.mrf.mxu3 }
 0x1d7   : > { %1278 = vst [vmem:[%s3889_s16 + $0x18] sm:$0xff] %v1265_v63  ;;  %v1156_v27 = vadd.f32 %v1155_v25, %v1118_v7 }
 0x1d8   : > { %v1196_v8 = vpop.f32.mrf.mxu1  ;;  %v1234_v12 = vpop.f32.mrf.mxu2 }
 0x1d9   : > { %v1197_v18 = vadd.f32 %v1196_v8, %v1156_v27 }
 0x1db   : > { %v1235_v32 = vadd.f32 %v1234_v12, %v1197_v18 }
 0x1dd   : > { %v1269_v34 = vadd.f32 %v1268_v28, %v1235_v32 }
 0x1de   : > { %v1160_v36 = vpop.f32.mrf.mxu0  ;;  %v1272_v43 = vpop.f32.mrf.mxu3 }
 0x1df   : > { %1280 = vst [vmem:[%s3889_s16 + $0x28] sm:$0xff] %v1269_v34  ;;  %v1161_v37 = vadd.f32 %v1160_v36, %v1122_v29 }
 0x1e0   : > { %v1202_v44 = vpop.f32.mrf.mxu1  ;;  %v1238_v45 = vpop.f32.mrf.mxu2 }
 0x1e1   : > { %v1203_v46 = vadd.f32 %v1202_v44, %v1161_v37 }
 0x1e3   : > { %v1239_v47 = vadd.f32 %v1238_v45, %v1203_v46 }
 0x1e5   : > { %v1273_v15 = vadd.f32 %v1272_v43, %v1239_v47 }
 0x1e7   : > { %1282 = vst [vmem:[%s3889_s16 + $0x38] sm:$0xff] %v1273_v15 }
 0x21e   : > { %v1333_v51 = vpop.f32.mrf.mxu0 }
 0x21f   : > { %v1334_v59 = vadd.f32 %v1333_v51, %v3996_v54 }
 0x224   : > { %v1407_v0 = vpop.f32.mrf.mxu3 }
 0x226   : > { %v1359_v2 = vpop.f32.mrf.mxu1  ;;  %v1383_v30 = vpop.f32.mrf.mxu2 }
 0x227   : > { %v1360_v3 = vadd.f32 %v1359_v2, %v1334_v59  ;;  %v1431_v48 = vpop.f32.mrf.mxu0 }
 0x229   : > { %v1384_v16 = vadd.f32 %v1383_v30, %v1360_v3 }
 0x22b   : > { %v1408_v4 = vadd.f32 %v1407_v0, %v1384_v16 }
 0x22d   : > { %v1432_v31 = vadd.f32 %v1431_v48, %v1408_v4 }
 0x22e   : > { %v1453_v35 = vpop.f32.mrf.mxu1  ;;  %v1505_v42 = vpop.f32.mrf.mxu3 }
 0x22f   : > { %v1454_v56 = vadd.f32 %v1453_v35, %v1432_v31  ;;  %v1479_v62 = vpop.f32.mrf.mxu2  ;;  %v1529_v10 = vpop.f32.mrf.mxu0 }
 0x230   : > { %v1480_v14 = vadd.f32 %v1479_v62, %v3996_v54 }
 0x231   : > { %v3144_v39 = vmul.f32 -1.442695, %v1454_v56  ;;  %v1646_v56 = vlaneseq }
 0x232   : > { %v1506_v20 = vadd.f32 %v1505_v42, %v1480_v14 }
 0x233   : > { %3256 = vpow2.f32 %v3144_v39  ;;  %vm4021_vm7 = vcmp.lt.s32.totalorder %v1646_v56, 256 }
 0x234   : > { %v1530_v26 = vadd.f32 %v1529_v10, %v1506_v20 }
 0x236   : > { %v1553_v40 = vpop.f32.mrf.mxu1  ;;  %v1599_v50 = vpop.f32.mrf.mxu3 }
 0x237   : > { %v1554_v52 = vadd.f32 %v1553_v40, %v1530_v26  ;;  %v1577_v60 = vpop.f32.mrf.mxu2  ;;  %v1696_v33 = vpop.f32.mrf.mxu0 }
 0x239   : > { %v3257_v38 = vpop.eup %3256  ;;  %v1578_v49 = vadd.f32 %v1577_v60, %v1554_v52 }
 0x23a   : > { %v4000_v11 = vadd.f32 1.0, %v3257_v38 }
 0x23b   : > { %v1600_v53 = vadd.f32 %v1599_v50, %v1578_v49 }
 0x23c   : > { %3258 = vrcp.f32 %v4000_v11  ;;  %vm1615_vm0 = vweird.f32 %v4000_v11  ;;  %v1619_v35 = vand.u32 2147483647, %v4000_v11  ;;  %v1621_v42 = vand.u32 2147483648, %v4000_v11 }
 0x23d   : > { %v3145_v5 = vmul.f32 -1.442695, %v1600_v53 }
 0x23e   : > { %v1737_v6 = vpop.f32.mrf.mxu1  ;;  %v1794_v58 = vpop.f32.mrf.mxu3  ;;  %v1622_v60 = vor.u32 1.1754944e-38, %v1621_v42  ;;  %vm1620_vm8 = vcmp.eq.f32.partialorder %v1619_v35, 8.507059e+37 }
 0x23f   : > { %3260 = vpow2.f32 %v3145_v5  ;;  %v1738_v9 = vadd.f32 %v1737_v6, %v1696_v33  ;;  %v1767_v61 = vpop.f32.mrf.mxu2  ;;  %v1827_v13 = vpop.f32.mrf.mxu0 }
 0x241   : > { %v1768_v19 = vadd.f32 %v1767_v61, %v1738_v9 }
 0x242   : > { %v4003_v21 = vpop.eup %3258 }
 0x243   : > { %v1795_v22 = vadd.f32 %v1794_v58, %v1768_v19  ;;  %v1611_v7 = vmul.f32 %v4003_v21, %v4000_v11  ;;  %vm1616_vm14 = vweird.f32 %v4003_v21 }
 0x244   : > { %vm4013_vm2 = vmor %vm1615_vm0, %vm1616_vm14 }
 0x245   : > { %v3261_v23 = vpop.eup %3260  ;;  %v1828_v41 = vadd.f32 %v1827_v13, %v1795_v22  ;;  %v1612_v28 = vsub.f32 1.0, %v1611_v7 }
 0x246   : > { %v1609_v24 = vadd.f32 1.0, %v3261_v23  ;;  %v1852_v63 = vpop.f32.mrf.mxu1  ;;  %v1922_v25 = vpop.f32.mrf.mxu3 }
 0x247   : > { %v1853_v27 = vadd.f32 %v1852_v63, %v1828_v41  ;;  %v1881_v8 = vpop.f32.mrf.mxu2  ;;  %v1952_v29 = vpop.f32.mrf.mxu0  ;;  %v1613_v44 = vmul.f32 %v4003_v21, %v1612_v28 }
 0x248   : > { %3262 = vrcp.f32 %v1609_v24  ;;  %v1923_v18 = vadd.f32 %v1922_v25, %v1881_v8  ;;  %v1634_v30 = vand.u32 2147483647, %v1609_v24  ;;  %v1636_v48 = vand.u32 2147483648, %v1609_v24 }
 0x249   : > { %v2040_v12 = vrot.slane %v1853_v27, 4  ;;  %v1614_v3 = vadd.f32 %v4003_v21, %v1613_v44  ;;  %vm1630_vm3 = vweird.f32 %v1609_v24 }
 0x24a   : > { %v1953_v36 = vadd.f32 %v1952_v29, %v1923_v18  ;;  %vm1635_vm5 = vcmp.eq.f32.partialorder %v1634_v30, 8.507059e+37  ;;  %v1637_v20 = vor.u32 1.1754944e-38, %v1636_v48 }
 0x24b   : > { %v2041_v32 = vmax.f32 %v1853_v27, %v2040_v12  ;;  %v1618_v26 = vsel %vm4013_vm2, %v4003_v21, %v1614_v3 }
 0x24c   : > { %v1623_v53 = vsel %vm1620_vm8, %v1622_v60, %v1618_v26  ;;  %v3158_v26 = vld [vmem:[%s3656_s14 + $0x38] sm:$0xff] }
 0x24d   : > { %v2042_v34 = vrot.slane %v2041_v32, 2 }
 0x24e   : > { %v3263_v37 = vpop.eup %3262  ;;  %v1979_v45 = vpop.f32.mrf.mxu1 }
 0x24f   : > { %v1626_v46 = vmul.f32 %v3263_v37, %v1609_v24  ;;  %v2043_v43 = vmax.f32 %v2041_v32, %v2042_v34  ;;  %v1980_v47 = vadd.f32 %v1979_v45, %v1953_v36  ;;  %v2012_v15 = vpop.f32.mrf.mxu2  ;;  %vm1631_vm15 = vweird.f32 %v3263_v37  ;;  %v3155_v24 = vld [vmem:[%s3656_s14 + $0x20] sm:$0xff] }
 0x250   : > { %v2037_v51 = vpop.f32.mrf.mxu3  ;;  %vm1632_vm4 = vmor %vm1630_vm3, %vm1631_vm15 }
 0x251   : > { %v1627_v59 = vsub.f32 1.0, %v1626_v46  ;;  %v2044_v0 = vrot.slane %v2043_v43, 1  ;;  %v2013_v2 = vadd.f32 %v2012_v15, %v1980_v47  ;;  %v3156_v47 = vld [vmem:[%s3656_s14 + $0x28] sm:$0xff] }
 0x253   : > { %v1628_v16 = vmul.f32 %v3263_v37, %v1627_v59  ;;  %v2045_v4 = vmax.f32 %v2043_v43, %v2044_v0  ;;  %v2038_v31 = vadd.f32 %v2037_v51, %v2013_v2  ;;  %v2104_v59 = vsel %vm784_vm1, %v3156_v47, 0  ;;  %v3157_v0 = vld [vmem:[%s3656_s14 + $0x30] sm:$0xff]  ;;  %s3332_s14 = scalar_lea.hbm %s3331_s8, 128 }
 0x254   : > { %v4048_v3 = vand.u32 4294901760, %v2104_v59  ;;  %p3333_p6 = scmp.ne.s32.totalorder %s3331_s8, %s3332_s14  ;;  %p3338_p3 = scmp.lt.s32.totalorder %s3336_s19, %s3332_s14 }
 0x255   : > { %v1629_v10 = vadd.f32 %v3263_v37, %v1628_v16  ;;  %v2052_v14 = vsub.f32 %v1853_v27, %v2045_v4  ;;  %v2046_v39 = vrot.slane %v2038_v31, 4  ;;  %v2101_v27 = vsel %vm784_vm1, %v3155_v24, 0 }
 0x256   : > { %v4037_v18 = vand.u32 4294901760, %v2101_v27  ;;  %v4053_v4 = vsub.f32 %v2104_v59, %v4048_v3  ;;  %p3334_p13 = pnand %p3333_p6, %p3510_p11  ;;  %p3339_p4 = por %p3338_p3, %p3337_p1 }
 0x257   : > { %v1633_v40 = vsel %vm1632_vm4, %v3263_v37, %v1629_v10  ;;  %v2054_v50 = vmul.f32 1.442695, %v2052_v14  ;;  %v2047_v52 = vmax.f32 %v2038_v31, %v2046_v39 }
 0x258   : > { %v1638_v33 = vsel %vm1635_vm5, %v1637_v20, %v1633_v40  ;;  %v4040_v34 = vsub.f32 %v2101_v27, %v4037_v18  ;;  %v4059_v10 = vand.u32 4294901760, %v4053_v4  ;;  %p3335_p0 = pneg %p3334_p13 }
 0x259   : > { %v1642_v49 = vrot.slane %v1638_v33, 7  ;;  %3264 = vpow2.f32 %v2054_v50  ;;  %v2048_v11 = vrot.slane %v2047_v52, 2 }
 0x25a   : > { %v4043_v43 = vand.u32 4294901760, %v4040_v34  ;;  %v2140_v33 = vsub.f32 %v4053_v4, %v4059_v10  ;;  %p3340_p7 = pnand %p3339_p4, %p3335_p0 }
 0x25b   : > { %v2049_v5 = vmax.f32 %v2047_v52, %v2048_v11  ;;  %v1644_v6 = vsel %vm1643_vm6, %v1623_v53, %v1642_v49 }
 0x25c   : > { %1650 = vst.msk [vmem:[%s4026_s29] sm:$0x3] %vm4021_vm7, %v1644_v6  ;;  %v2132_v48 = vsub.f32 %v4040_v34, %v4043_v43 }
 0x25d   : > { %v2050_v58 = vrot.slane %v2049_v5, 1 }
 0x25e   : > { %v4056_v62 = vand.u32 4294901760, %v2132_v48 }
 0x25f   : > { %v3265_v9 = vpop.eup %3264  ;;  %v2051_v61 = vmax.f32 %v2049_v5, %v2050_v58  ;;  %v2110_v5 = vsel %vm784_vm1, %v3158_v26, 0 }
 0x260   : > { %v2058_v13 = vrot.slane %v3265_v9, 4 }
 0x261   : > { %v2053_v19 = vsub.f32 %v2038_v31, %v2051_v61  ;;  %v2107_v31 = vsel %vm784_vm1, %v3157_v0, 0  ;;  %v2141_v61 = vand.u32 4294901760, %v2140_v33 }
 0x262   : > { %v2059_v21 = vadd.f32 %v3265_v9, %v2058_v13  ;;  %v4061_v14 = vand.u32 4294901760, %v2107_v31 }
 0x263   : > { %v2056_v22 = vmul.f32 1.442695, %v2053_v19  ;;  %v4076_v19 = vand.u32 4294901760, %v2110_v5 }
 0x264   : > { %v2060_v23 = vrot.slane %v2059_v21, 2  ;;  %v4069_v49 = vsub.f32 %v2107_v31, %v4061_v14 }
 0x265   : > { %3266 = vpow2.f32 %v2056_v22 }
 0x266   : > { %v2061_v41 = vadd.f32 %v2060_v23, %v2059_v21  ;;  %v4074_v13 = vand.u32 4294901760, %v4069_v49 }
 0x268   : > { %v2062_v7 = vrot.slane %v2061_v41, 1  ;;  %v2148_v24 = vsub.f32 %v4069_v49, %v4074_v13 }
 0x26a   : > { %v2063_v63 = vadd.f32 %v2062_v7, %v2061_v41 }
 0x26b   : > { %v4032_v25 = vpop.eup %3266 }
 0x26c   : > { %3268 = vrcp.f32 %v2063_v63  ;;  %v2064_v8 = vrot.slane %v4032_v25, 4  ;;  %v2081_v46 = vand.u32 2147483648, %v2063_v63  ;;  %v2079_v51 = vand.u32 2147483647, %v2063_v63 }
 0x26d   : > { %vm2075_vm10 = vweird.f32 %v2063_v63 }
 0x26e   : > { %v2065_v12 = vadd.f32 %v4032_v25, %v2064_v8  ;;  %v2082_v30 = vor.u32 1.1754944e-38, %v2081_v46  ;;  %vm2080_vm12 = vcmp.eq.f32.partialorder %v2079_v51, 8.507059e+37 }
 0x270   : > { %v2066_v28 = vrot.slane %v2065_v12, 2 }
 0x272   : > { %v3269_v29 = vpop.eup %3268  ;;  %v2067_v32 = vadd.f32 %v2066_v28, %v2065_v12 }
 0x273   : > { %v2071_v36 = vmul.f32 %v3269_v29, %v2063_v63  ;;  %vm2076_vm9 = vweird.f32 %v3269_v29  ;;  %v2154_v63 = vsub.f32 %v2110_v5, %v4076_v19 }
 0x274   : > { %v2068_v37 = vrot.slane %v2067_v32, 1  ;;  %vm2077_vm11 = vmor %vm2075_vm10, %vm2076_vm9 }
 0x275   : > { %v2072_v44 = vsub.f32 1.0, %v2071_v36  ;;  %v2155_v28 = vand.u32 4294901760, %v2154_v63 }
 0x276   : > { %v2069_v45 = vadd.f32 %v2068_v37, %v2067_v32 }
 0x277   : > { %v2073_v15 = vmul.f32 %v3269_v29, %v2072_v44  ;;  %v2156_v37 = vsub.f32 %v2154_v63, %v2155_v28 }
 0x278   : > { %3270 = vrcp.f32 %v2069_v45  ;;  %v2094_v52 = vand.u32 2147483647, %v2069_v45  ;;  %v2096_v60 = vand.u32 2147483648, %v2069_v45  ;;  %vm2090_vm14 = vweird.f32 %v2069_v45 }
 0x279   : > { %v2074_v2 = vadd.f32 %v3269_v29, %v2073_v15  ;;  %v2157_v47 = vand.u32 4294901760, %v2156_v37 }
 0x27a   : > { %vm2095_vm0 = vcmp.eq.f32.partialorder %v2094_v52, 8.507059e+37 }
 0x27b   : > { %v2078_v16 = vsel %vm2077_vm11, %v3269_v29, %v2074_v2 }
 0x27c   : > { %v2083_v35 = vsel %vm2080_vm12, %v2082_v30, %v2078_v16 }
 0x27d   : > { %v2084_v42 = vmul.f32 %v3265_v9, %v2083_v35  ;;  %v2097_v9 = vor.u32 1.1754944e-38, %v2096_v60 }
 0x27e   : > { %v3271_v56 = vpop.eup %3270 }
 0x27f   : > { %v2127_v39 = vand.u32 4294901760, %v2084_v42  ;;  %v2086_v20 = vmul.f32 %v3271_v56, %v2069_v45  ;;  %vm2091_vm13 = vweird.f32 %v3271_v56  ;;  %v2599_v41 = vmul.f32 1.442695, %v2084_v42 }
 0x280   : > { %vm2092_vm15 = vmor %vm2090_vm14, %vm2091_vm13 }
 0x281   : > { %2128 = vmatpush.msra.mxu0 %v2127_v39  ;;  %2255 = vmatpush.msra.mxu3 %v2127_v39  ;;  %v2178_v40 = vsub.f32 %v2084_v42, %v2127_v39  ;;  %v2087_v50 = vsub.f32 1.0, %v2086_v20  ;;  %3272 = vpow2.f32 %v2599_v41 }
 0x282   : > { %2134 = vmatmul.f32.vlgmr.msra.gmra.mxu0 %v4056_v62  ;;  %2259 = vmatmul.f32.vlgmr.msra.gmra.mxu3 %v4043_v43 }
 0x283   : > { %2217 = vmatpush.msra.mxu2 %v2178_v40  ;;  %v2179_v11 = vand.u32 4294901760, %v2178_v40  ;;  %v2088_v53 = vmul.f32 %v3271_v56, %v2087_v50 }
 0x284   : > { %2220 = vmatmul.f32.vlgmr.msra.gmra.mxu2 %v4040_v34 }
 0x285   : > { %2299 = vmatpush.msrb.mxu0 %v2179_v11  ;;  %v2180_v6 = vsub.f32 %v2178_v40, %v2179_v11  ;;  %v2089_v58 = vadd.f32 %v3271_v56, %v2088_v53 }
 0x287   : > { %v2181_v21 = vand.u32 4294901760, %v2180_v6  ;;  %v2093_v22 = vsel %vm2092_vm15, %v3271_v56, %v2089_v58  ;;  %v4085_v36 = vpop.eup %3272 }
 0x288   : > { %v2098_v23 = vsel %vm2095_vm0, %v2097_v9, %v2093_v22 }
 0x289   : > { %2182 = vmatpush.msra.mxu1 %v2181_v21  ;;  %v2099_v7 = vmul.f32 %v4032_v25, %v2098_v23  ;;  %v2149_v25 = vand.u32 4294901760, %v2148_v24 }
 0x28a   : > { %2142 = vmatmul.f32.gmra.mxu0 %v2141_v61  ;;  %2184 = vmatmul.f32.vlgmr.msra.gmra.mxu1 %v4037_v18 }
 0x28b   : > { %2333 = vmatpush.msrb.mxu1 %v2127_v39  ;;  %v2366_v27 = vand.u32 4294901760, %v2099_v7  ;;  %v2601_v8 = vmul.f32 1.442695, %v2099_v7  ;;  %2265 = vmatmul.f32.gmra.mxu3 %v4059_v10 }
 0x28c   : > { %2225 = vmatmul.f32.gmra.mxu2 %v4053_v4 }
 0x28d   : > { %2367 = vmatpush.msrb.mxu2 %v2366_v27  ;;  %2494 = vmatpush.msra.mxu1 %v2366_v27  ;;  %v2417_v12 = vsub.f32 %v2099_v7, %v2366_v27  ;;  %3274 = vpow2.f32 %v2601_v8 }
 0x28f   : > { %2456 = vmatpush.msra.mxu0 %v2417_v12  ;;  %v2418_v29 = vand.u32 4294901760, %v2417_v12 }
 0x291   : > { %2538 = vmatpush.msra.mxu2 %v2418_v29  ;;  %v2419_v32 = vsub.f32 %v2417_v12, %v2418_v29 }
 0x292   : > { %2150 = vmatmul.f32.gmra.mxu0 %v2149_v25  ;;  %2188 = vmatmul.f32.gmra.mxu1 %v4048_v3 }
 0x293   : > { %v4087_v44 = vpop.eup %3274  ;;  %v2420_v45 = vand.u32 4294901760, %v2419_v32  ;;  %2271 = vmatmul.f32.gmra.mxu3 %v4074_v13 }
 0x294   : > { %v2603_v46 = vadd.f32 %v4087_v44, %v4085_v36  ;;  %2230 = vmatmul.f32.gmra.mxu2 %v4069_v49 }
 0x295   : > { %2421 = vmatpush.msrb.mxu3 %v2420_v45 }
 0x296   : > { %2604 = vadd.xlane.f32.xlu0 %v2603_v46 }
 0x297   : > { %2572 = vmatpush.msra.mxu3 %v2366_v27 }
 0x29a   : > { %2158 = vmatmul.f32.gmra.mxu0 %v2157_v47  ;;  %2192 = vmatmul.f32.gmra.mxu1 %v4061_v14 }
 0x29b   : > { %2277 = vmatmul.f32.gmra.mxu3 %v2155_v28 }
 0x29c   : > { %2235 = vmatmul.f32.gmra.mxu2 %v2154_v63 }
 0x2a2   : > { %2301 = vmatmul.f32.vlgmr.msrb.gmra.mxu0 %v4037_v18  ;;  %2196 = vmatmul.f32.gmra.mxu1 %v4076_v19 }
 0x2a3   : > { %2423 = vmatmul.f32.vlgmr.msrb.gmra.mxu3 %v4037_v18 }
 0x2a4   : > { %2373 = vmatmul.f32.vlgmr.msrb.gmra.mxu2 %v4056_v62 }
 0x2aa   : > { %2305 = vmatmul.f32.gmra.mxu0 %v4048_v3  ;;  %2335 = vmatmul.f32.vlgmr.msrb.gmra.mxu1 %v4037_v18 }
 0x2ab   : > { %2427 = vmatmul.f32.gmra.mxu3 %v4048_v3 }
 0x2ac   : > { %2381 = vmatmul.f32.gmra.mxu2 %v2141_v61 }
 0x2b2   : > { %2309 = vmatmul.f32.gmra.mxu0 %v4061_v14  ;;  %2339 = vmatmul.f32.gmra.mxu1 %v4048_v3 }
 0x2b3   : > { %2431 = vmatmul.f32.gmra.mxu3 %v4061_v14 }
 0x2b4   : > { %2389 = vmatmul.f32.gmra.mxu2 %v2149_v25 }
 0x2ba   : > { %2313 = vmatmul.f32.gmra.mxu0 %v4076_v19  ;;  %2343 = vmatmul.f32.gmra.mxu1 %v4061_v14 }
 0x2bb   : > { %2435 = vmatmul.f32.gmra.mxu3 %v4076_v19 }
 0x2bc   : > { %2397 = vmatmul.f32.gmra.mxu2 %v2157_v47 }
 0x2c2   : > { %2459 = vmatmul.f32.vlgmr.msra.gmra.mxu0 %v4040_v34  ;;  %2347 = vmatmul.f32.gmra.mxu1 %v4076_v19 }
 0x2c3   : > { %2574 = vmatmul.f32.vlgmr.msra.gmra.mxu3 %v4037_v18 }
 0x2c4   : > { %2540 = vmatmul.f32.vlgmr.msra.gmra.mxu2 %v4037_v18 }
 0x2ca   : > { %2464 = vmatmul.f32.gmra.mxu0 %v4053_v4  ;;  %2498 = vmatmul.f32.vlgmr.msra.gmra.mxu1 %v4043_v43 }
 0x2cb   : > { %2578 = vmatmul.f32.gmra.mxu3 %v4048_v3 }
 0x2cc   : > { %2544 = vmatmul.f32.gmra.mxu2 %v4048_v3 }
 0x2d2   : > { %2469 = vmatmul.f32.gmra.mxu0 %v4069_v49  ;;  %2504 = vmatmul.f32.gmra.mxu1 %v4059_v10 }
 0x2d3   : > { %2582 = vmatmul.f32.gmra.mxu3 %v4061_v14 }
 0x2d4   : > { %2548 = vmatmul.f32.gmra.mxu2 %v4061_v14 }
 0x2da   : > { %2474 = vmatmul.f32.gmra.mxu0 %v2154_v63  ;;  %2510 = vmatmul.f32.gmra.mxu1 %v4074_v13 }
 0x2db   : > { %2586 = vmatmul.f32.gmra.mxu3 %v4076_v19 }
 0x2dc   : > { %2552 = vmatmul.f32.gmra.mxu2 %v4076_v19 }
 0x2e2   : > { %2516 = vmatmul.f32.gmra.mxu1 %v2155_v28 }
 0x2ff   : > { %v2135_v34 = vpop.f32.mrf.mxu0 }
 0x305   : > { %v2260_v59 = vpop.f32.mrf.mxu3 }
 0x307   : > { %v2185_v43 = vpop.f32.mrf.mxu1  ;;  %v2221_v15 = vpop.f32.mrf.mxu2 }
 0x308   : > { %v2143_v2 = vpop.f32.mrf.mxu0  ;;  %v2186_v49 = vadd.f32 %v2185_v43, %v2135_v34 }
 0x309   : > { %v2605_v18 = vpop.xlane.xlu0 %2604 }
 0x30a   : > { %3276 = vrcp.f32 %v2605_v18  ;;  %v2617_v30 = vand.u32 2147483648, %v2605_v18  ;;  %v2615_v4 = vand.u32 2147483647, %v2605_v18  ;;  %vm2611_vm2 = vweird.f32 %v2605_v18 }
 0x30b   : > { %v2222_v61 = vadd.f32 %v2221_v15, %v2186_v49 }
 0x30c   : > { %v2618_v42 = vor.u32 1.1754944e-38, %v2617_v30  ;;  %vm2616_vm4 = vcmp.eq.f32.partialorder %v2615_v4, 8.507059e+37 }
 0x30d   : > { %v2261_v23 = vadd.f32 %v2260_v59, %v2222_v61 }
 0x30e   : > { %v2266_v56 = vpop.f32.mrf.mxu3 }
 0x30f   : > { %v2189_v48 = vpop.f32.mrf.mxu1  ;;  %v2226_v31 = vpop.f32.mrf.mxu2 }
 0x310   : > { %v3277_v51 = vpop.eup %3276  ;;  %v2151_v14 = vpop.f32.mrf.mxu0  ;;  %v2190_v41 = vadd.f32 %v2189_v48, %v2143_v2 }
 0x311   : > { %v2607_v0 = vmul.f32 %v3277_v51, %v2605_v18  ;;  %vm2612_vm1 = vweird.f32 %v3277_v51 }
 0x312   : > { %vm2613_vm3 = vmor %vm2611_vm2, %vm2612_vm1  ;;  %v2227_v63 = vadd.f32 %v2226_v31, %v2190_v41 }
 0x313   : > { %v2608_v3 = vsub.f32 1.0, %v2607_v0 }
 0x314   : > { %v2267_v28 = vadd.f32 %v2266_v56, %v2227_v63 }
 0x315   : > { %v2609_v16 = vmul.f32 %v3277_v51, %v2608_v3 }
 0x316   : > { %v2272_v11 = vpop.f32.mrf.mxu3 }
 0x317   : > { %v2610_v35 = vadd.f32 %v3277_v51, %v2609_v16  ;;  %v2193_v26 = vpop.f32.mrf.mxu1  ;;  %v2231_v52 = vpop.f32.mrf.mxu2 }
 0x318   : > { %v2159_v6 = vpop.f32.mrf.mxu0  ;;  %v2194_v29 = vadd.f32 %v2193_v26, %v2151_v14 }
 0x319   : > { %v2614_v62 = vsel %vm2613_vm3, %v3277_v51, %v2610_v35 }
 0x31a   : > { %v2619_v10 = vsel %vm2616_vm4, %v2618_v42, %v2614_v62 }
 0x31b   : > { %v2620_v39 = vmul.f32 %v4085_v36, %v2619_v10  ;;  %v2621_v20 = vmul.f32 %v4087_v44, %v2619_v10 }
 0x31d   : > { %v2637_v40 = vand.u32 4294901760, %v2620_v39  ;;  %v2783_v50 = vand.u32 4294901760, %v2621_v20 }
 0x31e   : > { %v2278_v7 = vpop.f32.mrf.mxu3 }
 0x31f   : > { %2638 = vmatpush.msrb.mxu0 %v2637_v40  ;;  %2714 = vmatpush.msrb.mxu3 %v2637_v40  ;;  %v2664_v60 = vsub.f32 %v2620_v39, %v2637_v40  ;;  %v2810_v33 = vsub.f32 %v2621_v20, %v2783_v50  ;;  %v2197_v13 = vpop.f32.mrf.mxu1  ;;  %v2236_v22 = vpop.f32.mrf.mxu2 }
 0x320   : > { %2644 = vmatmul.f32.vlgmr.msrb.gmra.mxu0 %v3785_v17  ;;  %2718 = vmatmul.f32.vlgmr.msrb.gmra.mxu3 %v3770_v1  ;;  %v2302_v24 = vpop.f32.mrf.mxu0  ;;  %v2198_v18 = vadd.f32 %v2197_v13, %v2159_v6 }
 0x321   : > { %2691 = vmatpush.msrb.mxu2 %v2664_v60  ;;  %v2665_v53 = vand.u32 4294901760, %v2664_v60  ;;  %v2811_v5 = vand.u32 4294901760, %v2810_v33  ;;  %v2303_v27 = vadd.f32 %v2302_v24, %v2261_v23 }
 0x322   : > { %2694 = vmatmul.f32.vlgmr.msrb.gmra.mxu2 %v3759_v57 }
 0x323   : > { %2784 = vmatpush.msra.mxu2 %v2783_v50  ;;  %2740 = vmatpush.msra.mxu0 %v2665_v53  ;;  %v2666_v58 = vsub.f32 %v2664_v60, %v2665_v53  ;;  %v2812_v9 = vsub.f32 %v2810_v33, %v2811_v5 }
 0x325   : > { %2886 = vmatpush.msrb.mxu2 %v2811_v5  ;;  %2837 = vmatpush.msrb.mxu0 %v2810_v33  ;;  %v2667_v19 = vand.u32 4294901760, %v2666_v58  ;;  %v2813_v21 = vand.u32 4294901760, %v2812_v9 }
 0x326   : > { %v2424_v32 = vpop.f32.mrf.mxu3 }
 0x327   : > { %2668 = vmatpush.msrb.mxu1 %v2667_v19  ;;  %2814 = vmatpush.msra.mxu3 %v2813_v21  ;;  %v2336_v8 = vpop.f32.mrf.mxu1  ;;  %v2374_v25 = vpop.f32.mrf.mxu2 }
 0x328   : > { %2670 = vmatmul.f32.vlgmr.msrb.gmra.mxu1 %v3756_v55  ;;  %2742 = vmatmul.f32.vlgmr.msra.gmra.mxu0 %v3756_v55  ;;  %v2337_v12 = vadd.f32 %v2336_v8, %v2303_v27  ;;  %v2306_v36 = vpop.f32.mrf.mxu0  ;;  %v2425_v31 = vadd.f32 %v2424_v32, %v2374_v25 }
 0x329   : > { %2762 = vmatpush.msra.mxu1 %v2637_v40  ;;  %2908 = vmatpush.msrb.mxu3 %v2783_v50  ;;  %v2307_v37 = vadd.f32 %v2306_v36, %v2267_v28 }
 0x32a   : > { %2816 = vmatmul.f32.vlgmr.msra.gmra.mxu3 %v3756_v55  ;;  %2790 = vmatmul.f32.vlgmr.msra.gmra.mxu2 %v3785_v17  ;;  %3159 = vst [vmem:[%s3889_s16 + $0x40] sm:$0xff] %v2337_v12  ;;  %v2232_v17 = vadd.f32 %v2231_v52, %v2194_v29 }
 0x32b   : > { %2860 = vmatpush.msrb.mxu1 %v2783_v50 }
 0x32c   : > { %v2273_v47 = vadd.f32 %v2272_v11, %v2232_v17 }
 0x32e   : > { %v2428_v34 = vpop.f32.mrf.mxu3 }
 0x32f   : > { %v2340_v44 = vpop.f32.mrf.mxu1  ;;  %v2382_v46 = vpop.f32.mrf.mxu2 }
 0x330   : > { %2764 = vmatmul.f32.vlgmr.msra.gmra.mxu1 %v3756_v55  ;;  %2840 = vmatmul.f32.vlgmr.msrb.gmra.mxu0 %v3759_v57  ;;  %v2341_v45 = vadd.f32 %v2340_v44, %v2307_v37  ;;  %v2310_v43 = vpop.f32.mrf.mxu0  ;;  %v2237_v57 = vadd.f32 %v2236_v22, %v2198_v18  ;;  %v2429_v14 = vadd.f32 %v2428_v34, %v2382_v46 }
 0x331   : > { %v2311_v15 = vadd.f32 %v2310_v43, %v2273_v47 }
 0x332   : > { %2910 = vmatmul.f32.vlgmr.msrb.gmra.mxu3 %v3756_v55  ;;  %2888 = vmatmul.f32.vlgmr.msrb.gmra.mxu2 %v3756_v55  ;;  %3161 = vst [vmem:[%s3889_s16 + $0x50] sm:$0xff] %v2341_v45  ;;  %v2279_v55 = vadd.f32 %v2278_v7, %v2237_v57 }
 0x336   : > { %v2432_v2 = vpop.f32.mrf.mxu3 }
 0x337   : > { %v2344_v51 = vpop.f32.mrf.mxu1  ;;  %v2390_v0 = vpop.f32.mrf.mxu2 }
 0x338   : > { %2864 = vmatmul.f32.vlgmr.msrb.gmra.mxu1 %v3770_v1  ;;  %v2345_v59 = vadd.f32 %v2344_v51, %v2311_v15  ;;  %v2314_v3 = vpop.f32.mrf.mxu0  ;;  %v2433_v49 = vadd.f32 %v2432_v2, %v2390_v0 }
 0x339   : > { %v2315_v30 = vadd.f32 %v2314_v3, %v2279_v55 }
 0x33a   : > { %3163 = vst [vmem:[%s3889_s16 + $0x60] sm:$0xff] %v2345_v59 }
 0x33e   : > { %v2436_v35 = vpop.f32.mrf.mxu3 }
 0x33f   : > { %v2348_v48 = vpop.f32.mrf.mxu1  ;;  %v2398_v4 = vpop.f32.mrf.mxu2 }
 0x340   : > { %v2349_v16 = vadd.f32 %v2348_v48, %v2315_v30  ;;  %v2460_v1 = vpop.f32.mrf.mxu0  ;;  %v2437_v19 = vadd.f32 %v2436_v35, %v2398_v4 }
 0x341   : > { %v2461_v42 = vadd.f32 %v2460_v1, %v2425_v31 }
 0x342   : > { %3165 = vst [vmem:[%s3889_s16 + $0x70] sm:$0xff] %v2349_v16 }
 0x346   : > { %v2575_v20 = vpop.f32.mrf.mxu3 }
 0x347   : > { %v2499_v56 = vpop.f32.mrf.mxu1  ;;  %v2541_v10 = vpop.f32.mrf.mxu2 }
 0x348   : > { %v2500_v62 = vadd.f32 %v2499_v56, %v2461_v42  ;;  %v2465_v40 = vpop.f32.mrf.mxu0 }
 0x349   : > { %v2466_v50 = vadd.f32 %v2465_v40, %v2429_v14 }
 0x34a   : > { %v2542_v39 = vadd.f32 %v2541_v10, %v2500_v62 }
 0x34c   : > { %v2576_v26 = vadd.f32 %v2575_v20, %v2542_v39 }
 0x34e   : > { %3160 = vst [vmem:[%s3889_s16 + $0x48] sm:$0xff] %v2576_v26  ;;  %v2579_v53 = vpop.f32.mrf.mxu3 }
 0x34f   : > { %v2505_v52 = vpop.f32.mrf.mxu1  ;;  %v2545_v33 = vpop.f32.mrf.mxu2 }
 0x350   : > { %v2506_v60 = vadd.f32 %v2505_v52, %v2466_v50  ;;  %v2470_v6 = vpop.f32.mrf.mxu0 }
 0x351   : > { %v2471_v58 = vadd.f32 %v2470_v6, %v2433_v49 }
 0x352   : > { %v2546_v11 = vadd.f32 %v2545_v33, %v2506_v60 }
 0x354   : > { %v2580_v5 = vadd.f32 %v2579_v53, %v2546_v11 }
 0x356   : > { %3162 = vst [vmem:[%s3889_s16 + $0x58] sm:$0xff] %v2580_v5  ;;  %v2583_v22 = vpop.f32.mrf.mxu3 }
 0x357   : > { %v2511_v9 = vpop.f32.mrf.mxu1  ;;  %v2549_v13 = vpop.f32.mrf.mxu2 }
 0x358   : > { %v2512_v61 = vadd.f32 %v2511_v9, %v2471_v58  ;;  %v2475_v41 = vpop.f32.mrf.mxu0 }
 0x359   : > { %v2476_v7 = vadd.f32 %v2475_v41, %v2437_v19 }
 0x35a   : > { %v2550_v21 = vadd.f32 %v2549_v13, %v2512_v61 }
 0x35c   : > { %v2584_v23 = vadd.f32 %v2583_v22, %v2550_v21 }
 0x35e   : > { %3164 = vst [vmem:[%s3889_s16 + $0x68] sm:$0xff] %v2584_v23  ;;  %v2587_v12 = vpop.f32.mrf.mxu3 }
 0x35f   : > { %v2517_v24 = vpop.f32.mrf.mxu1  ;;  %v2553_v27 = vpop.f32.mrf.mxu2 }
 0x360   : > { %v2518_v63 = vadd.f32 %v2517_v24, %v2476_v7 }
 0x362   : > { %v2554_v8 = vadd.f32 %v2553_v27, %v2518_v63 }
 0x364   : > { %v2588_v25 = vadd.f32 %v2587_v12, %v2554_v8 }
 0x366   : > { %3166 = vst [vmem:[%s3889_s16 + $0x78] sm:$0xff] %v2588_v25 }
 0x367   : > { %3343 = shalt.err (!%p3340_p7)
}
 0x368   : > { %s3418_s16 = smov 256   ;;  %s3419_s20 = smov 16  }
 0x369   : > { %3187 = dma.vmem_to_hbm [thread:$0]  (%p3510_p11), %s2979_s30, 2048, %s2981_s9, %s2960_s13, %s3418_s16, %s3418_s16, %s3419_s20  }
 0x36a   : > { %s3184_s21 = sshll.u32 %s3481_s4, 2  ;;  %s2995_s4 = sshll.u32 %s4026_s29, 4  ;;  %s2996_s4 = int_to_ptr.vmem [resolvable:$true] %s2995_s4 }
 0x36b   : > { %s2994_s9 = scalar_lea.hbm %s4213_s6, %s3184_s21  ;;  %s2965_s8 = scalar_lea.sflag [#allocation8], %s3546_s17 }
 0x36c   : > { %s2997_s13 = sshll.u32 %s2994_s9, 4  ;;  %s3364_s27 = scalar_lea.hbm %s4213_s6, 8  ;;  %s2998_s13 = int_to_ptr.hbm [resolvable:$true] %s2997_s13 }
 0x36d   : > { %s3358_s14 = sshra.s32 %s2998_s13, 4  ;;  %s3359_s14 = int_to_ptr.hbm [resolvable:$true] %s3358_s14 }
 0x36e   : > { %s3360_s15 = scalar_lea.hbm %s3359_s14, 4  ;;  %p3365_p2 = scmp.lt.s32.totalorder %s3359_s14, %s4213_s6 }
 0x36f   : > { %p3361_p5 = scmp.ne.s32.totalorder %s3359_s14, %s3360_s15  ;;  %p3366_p9 = scmp.lt.s32.totalorder %s3364_s27, %s3360_s15 }
 0x371   : > { %p3362_p8 = pnand %p3361_p5, %p3510_p11  ;;  %p3367_p6 = por %p3366_p9, %p3365_p2 }
 0x373   : > { %p3363_p10 = pneg %p3362_p8 }
 0x375   : > { %p3368_p13 = pnand %p3367_p6, %p3363_p10 }
 0x39d   : > { %v2645_v28 = vpop.f32.mrf.mxu0 }
 0x39e   : > { %v2646_v29 = vadd.f32 %v2645_v28, %v3996_v54 }
 0x3a3   : > { %v2719_v32 = vpop.f32.mrf.mxu3 }
 0x3a5   : > { %v2671_v36 = vpop.f32.mrf.mxu1  ;;  %v2695_v17 = vpop.f32.mrf.mxu2 }
 0x3a6   : > { %v2672_v37 = vadd.f32 %v2671_v36, %v2646_v29  ;;  %v2743_v44 = vpop.f32.mrf.mxu0 }
 0x3a8   : > { %v2696_v45 = vadd.f32 %v2695_v17, %v2672_v37 }
 0x3aa   : > { %v2720_v46 = vadd.f32 %v2719_v32, %v2696_v45 }
 0x3ac   : > { %v2744_v47 = vadd.f32 %v2743_v44, %v2720_v46 }
 0x3ad   : > { %v2817_v18 = vpop.f32.mrf.mxu3  ;;  %v2765_v34 = vpop.f32.mrf.mxu1 }
 0x3ae   : > { %v2791_v43 = vpop.f32.mrf.mxu2  ;;  %v2766_v57 = vadd.f32 %v2765_v34, %v2744_v47  ;;  %v2841_v51 = vpop.f32.mrf.mxu0 }
 0x3af   : > { %v2792_v15 = vadd.f32 %v2791_v43, %v3996_v54 }
 0x3b0   : > { %v3167_v59 = vmul.f32 -1.442695, %v2766_v57 }
 0x3b1   : > { %v2818_v0 = vadd.f32 %v2817_v18, %v2792_v15 }
 0x3b2   : > { %3278 = vpow2.f32 %v3167_v59 }
 0x3b3   : > { %v2842_v55 = vadd.f32 %v2841_v51, %v2818_v0 }
 0x3b5   : > { %v2865_v2 = vpop.f32.mrf.mxu1  ;;  %v2911_v48 = vpop.f32.mrf.mxu3 }
 0x3b6   : > { %v2889_v3 = vpop.f32.mrf.mxu2  ;;  %v2866_v30 = vadd.f32 %v2865_v2, %v2842_v55 }
 0x3b8   : > { %v3279_v16 = vpop.eup %3278  ;;  %v2890_v4 = vadd.f32 %v2889_v3, %v2866_v30 }
 0x3b9   : > { %v2920_v31 = vadd.f32 1.0, %v3279_v16 }
 0x3ba   : > { %v2912_v35 = vadd.f32 %v2911_v48, %v2890_v4 }
 0x3bb   : > { %3280 = vrcp.f32 %v2920_v31  ;;  %vm2927_vm9 = vweird.f32 %v2920_v31  ;;  %v2933_v33 = vand.u32 2147483648, %v2920_v31  ;;  %v2931_v11 = vand.u32 2147483647, %v2920_v31 }
 0x3bc   : > { %v3168_v1 = vmul.f32 -1.442695, %v2912_v35 }
 0x3bd   : > { %v2934_v9 = vor.u32 1.1754944e-38, %v2933_v33  ;;  %vm2932_vm14 = vcmp.eq.f32.partialorder %v2931_v11, 8.507059e+37 }
 0x3be   : > { %3282 = vpow2.f32 %v3168_v1 }
 0x3c1   : > { %v3281_v42 = vpop.eup %3280 }
 0x3c2   : > { %v2923_v62 = vmul.f32 %v3281_v42, %v2920_v31  ;;  %vm2928_vm5 = vweird.f32 %v3281_v42 }
 0x3c3   : > { %vm4167_vm10 = vmor %vm2927_vm9, %vm2928_vm5 }
 0x3c4   : > { %v3283_v56 = vpop.eup %3282  ;;  %v2924_v10 = vsub.f32 1.0, %v2923_v62 }
 0x3c5   : > { %v2921_v54 = vadd.f32 1.0, %v3283_v56 }
 0x3c6   : > { %v2925_v39 = vmul.f32 %v3281_v42, %v2924_v10 }
 0x3c7   : > { %3284 = vrcp.f32 %v2921_v54  ;;  %v2948_v40 = vand.u32 2147483648, %v2921_v54  ;;  %v2946_v60 = vand.u32 2147483647, %v2921_v54  ;;  %vm2942_vm11 = vweird.f32 %v2921_v54 }
 0x3c8   : > { %v2926_v50 = vadd.f32 %v3281_v42, %v2925_v39 }
 0x3c9   : > { %v2949_v5 = vor.u32 1.1754944e-38, %v2948_v40  ;;  %vm2947_vm13 = vcmp.eq.f32.partialorder %v2946_v60, 8.507059e+37 }
 0x3ca   : > { %v2930_v6 = vsel %vm4167_vm10, %v3281_v42, %v2926_v50 }
 0x3cb   : > { %v2935_v19 = vsel %vm2932_vm14, %v2934_v9, %v2930_v6 }
 0x3cd   : > { %v3285_v14 = vpop.eup %3284 }
 0x3ce   : > { %v2938_v20 = vmul.f32 %v3285_v14, %v2921_v54  ;;  %vm2943_vm8 = vweird.f32 %v3285_v14 }
 0x3cf   : > { %vm2944_vm12 = vmor %vm2942_vm11, %vm2943_vm8 }
 0x3d0   : > { %v2939_v26 = vsub.f32 1.0, %v2938_v20 }
 0x3d2   : > { %v2940_v52 = vmul.f32 %v3285_v14, %v2939_v26 }
 0x3d4   : > { %v2941_v53 = vadd.f32 %v3285_v14, %v2940_v52 }
 0x3d6   : > { %v2945_v58 = vsel %vm2944_vm12, %v3285_v14, %v2941_v53 }
 0x3d7   : > { %v2950_v61 = vsel %vm2947_vm13, %v2949_v5, %v2945_v58 }
 0x3d8   : > { %v2954_v13 = vrot.slane %v2950_v61, 7 }
 0x3da   : > { %v2955_v21 = vsel %vm1643_vm6, %v2935_v19, %v2954_v13 }
 0x3db   : > { %3169 = vst.msk [vmem:[%s4026_s29 + $0x2] sm:$0x3] %vm4021_vm7, %v2955_v21 }
 0x3dc   : > { %3371 = shalt.err (!%p3368_p13)
}
 0x3dd   : > { %s3420_s17 = smov 32   ;;  %s3421_s29 = smov 2  }
 0x3de   : > { %3188 = dma.vmem_to_hbm [thread:$0]  (%p3510_p11), %s2996_s4, 64, %s2998_s13, %s2965_s8, %s3420_s17, %s3420_s17, %s3421_s29  }
 0x3df PF: > { %s3012_s20 = sand.u32 1, %s3402_s23   ;;  %p4225_p0 = scmp.ge.s32.totalorder %s3414_s26, 2 }
 0x3e0   : > { %s3013_s21 = scalar_lea.sflag [#allocation5], %s3012_s20 }
 0x3e1   : > { %p3196_p1 = pnand %p4225_p0, %p3514_p12 }
 0x3e3   : > { %p3197_p3 = pneg %p3196_p1 }
 0x3e5   : > { %3393 = dma.done.wait (%p3197_p3), %s3013_s21, 2048  }
 0x3e6   : > { %3395 = vsyncadd (%p3197_p3), %s3013_s21, 4294965248  ;;  %s3023_s22 = scalar_lea.sflag [#allocation8], %s3012_s20 }
 0x3e7   : > { %3397 = dma.done.wait (%p3197_p3), %s3023_s22, 64  }
 0x3e8   : > { %3399 = vsyncadd (%p3197_p3), %s3023_s22, 4294967232  ;;  %p24_p11 = scmp.ge.s32.totalorder %s3485_s28, 4   ;;  %s4226_s23 = smov %s3406_s24 }
 0x3e9   : > { %s4227_s24 = smov %s3410_s25  ;;  %s4228_s25 = smov %s3497_s7 }
 0x3ea   : > { %s4229_s26 = smov %s3485_s28  ;;  %26 = sbr.rel (!%p24_p11) target bundleno = 9 (0x9), region = 113 }
 0x3ef   :  { %3029 = vsyncpa [#allocation4], 1 }
 0x3f0   :  { %3031 = vsyncpa [#allocation4 + $0x1], 1 }
 0x3f1   :  { %3032 = vsyncpa [#allocation5], 1 }
 0x3f2   :  { %3034 = vsyncpa [#allocation5 + $0x1], 1 }
 0x3f3   :  { %3035 = vsyncpa [#allocation8], 1 }
 0x3f4   :  { %3037 = vsyncpa [#allocation8 + $0x1], 1 }

</bundles_post_ra>
